<compile_context>
chip_gen: v5e
topology: v5e:2x2
jax: 0.10.0
libtpu: 0.0.40
codegen_flags: <defaults>
</compile_context>

<pallas_src>
import numpy as np
import jax
import jax.numpy as jnp
from jax.experimental import pallas as pl
from jax.experimental.pallas import tpu as pltpu

K = 5            # kernel size
KK = K * K       # 25 taps / conv output channels
PAD = K // 2     # 2
IMG = 28 + K - 1 # 32 (hard-coded in the PyTorch module)
N_OUT = 6        # n_kernels_output
N_IN = 1         # n_kernels_input
NCOL = N_OUT * KK  # 150


def _dynamic_layer_kernel(p_ref, w_ref, b_ref, t6_ref, s_ref, o_ref):
    # p_ref : (T, 25)    im2col patches for T output pixels (one grid block)
    # w_ref : (25, 150)  permuted conv weights, column 25*o+k = (out-ch o, tap k)
    # b_ref : (1, 150)   matching (permuted) biases
    # t6_ref: (25, 150)  0/1 matrix replicating the 25 taps per output channel
    # s_ref : (150, 6)   0/1 matrix summing the 25 taps of each output channel
    # o_ref : (T, 6)
    p = p_ref[...]
    # firstConv for all 6 DynamicKernels at once (channel order pre-permuted).
    fc = jnp.dot(p, w_ref[...], preferred_element_type=jnp.float32) + b_ref[...]
    # Replicate the taps 6x on the (idle) MXU instead of streaming a 6x larger
    # `patches_tiled` array from HBM.  Exact: each column sums a single 1*p term.
    pt = jnp.dot(p, t6_ref[...], preferred_element_type=jnp.float32)
    # Dynamic weighting: shifted-input * tanh(firstConv)   (EUP + VPU)
    prod = pt * jnp.tanh(fc)
    # Reduce the 25 taps of each output channel on the MXU (keep as matmul).
    o_ref[...] = jnp.dot(prod, s_ref[...], preferred_element_type=jnp.float32)


def dynamic_layer_forward(x, weights, biases, *, tile_r=2048):
    """x: (B, 1, 28, 28) float32; weights: (6, 25, 5, 5); biases: (6, 25)."""
    B = x.shape[0]
    assert x.shape[1] == N_IN and x.shape[2] == 28 and x.shape[3] == 28

    # Total padding seen by the conv = explicit F.pad(2) + conv padding(2) = 4.
    xpad4 = jnp.pad(x[:, 0].astype(jnp.float32),
                    ((0, 0), (K - 1, K - 1), (K - 1, K - 1)))          # (B,36,36)

    # im2col: tap k = dh*5+dw  ->  xpad4[b, h+dh, w+dw]
    # TODO(synk): taps could be built in-kernel from the raw padded image
    # (another ~4x HBM-read cut), but the lane->sublane relayout it needs has
    # no clean/robust Pallas lowering today; kept as wrapper glue.
    taps = [xpad4[:, dh:dh + IMG, dw:dw + IMG]
            for dh in range(K) for dw in range(K)]
    patches = jnp.stack(taps, axis=-1).reshape(B * IMG * IMG, KK)      # (R,25)

    # In the PyTorch double loop, the shifted input for (i, j) equals tap
    # k = 5*j + i, and it is weighted by tanh(firstConv channel 5*i + j).
    # perm[k] gives that matching conv channel.
    perm = np.array([K * (k % K) + k // K for k in range(KK)])
    wflat = weights.reshape(N_OUT, KK, KK)          # [o, conv_ch, tap]
    wperm = wflat[:, perm, :]                       # [o, k, tap]
    w_all = jnp.transpose(wperm, (2, 0, 1)).reshape(KK, NCOL)          # (25,150)
    b_all = biases[:, perm].reshape(1, NCOL)                           # (1,150)
    tile6 = jnp.asarray(np.tile(np.eye(KK, dtype=np.float32), (1, N_OUT)))      # (25,150)
    sel = jnp.asarray(np.repeat(np.eye(N_OUT, dtype=np.float32), KK, axis=0))   # (150,6)

    # Row tiling: pad R up to a multiple of tile_r; the extra zero rows are
    # computed and discarded.  ~2048-8192 rows per block keeps per-step
    # overhead small while fitting comfortably in VMEM (incl. v7x's 64 MiB).
    R = B * IMG * IMG
    tile_r = int(min(tile_r, R))
    tile_r = max(8, (tile_r // 8) * 8)
    n_blocks = pl.cdiv(R, tile_r)
    r_pad = n_blocks * tile_r
    if r_pad != R:
        patches = jnp.pad(patches, ((0, r_pad - R), (0, 0)))

    cost = pl.CostEstimate(
        flops=r_pad * (2 * KK * NCOL * 2 + 2 * NCOL * N_OUT + NCOL),
        transcendentals=r_pad * NCOL,
        bytes_accessed=r_pad * (KK + N_OUT) * 4
        + (2 * KK * NCOL + NCOL + NCOL * N_OUT) * 4,
    )

    out2d = pl.pallas_call(
        _dynamic_layer_kernel,
        out_shape=jax.ShapeDtypeStruct((r_pad, N_OUT), jnp.float32),
        grid_spec=pltpu.PrefetchScalarGridSpec(
            num_scalar_prefetch=0,
            grid=(n_blocks,),
            in_specs=[
                pl.BlockSpec((tile_r, KK), lambda i: (i, 0)),     # streamed
                pl.BlockSpec((KK, NCOL), lambda i: (0, 0)),       # resident
                pl.BlockSpec((1, NCOL), lambda i: (0, 0)),        # resident
                pl.BlockSpec((KK, NCOL), lambda i: (0, 0)),       # resident
                pl.BlockSpec((NCOL, N_OUT), lambda i: (0, 0)),    # resident
            ],
            out_specs=pl.BlockSpec((tile_r, N_OUT), lambda i: (i, 0)),
        ),
        compiler_params=pltpu.CompilerParams(
            dimension_semantics=("parallel",),
            vmem_limit_bytes=48 * 1024 * 1024,
        ),
        cost_estimate=cost,
    )(patches, w_all, b_all, tile6, sel)

    out = out2d[:R].reshape(B, IMG, IMG, N_OUT).transpose(0, 3, 1, 2)  # (B,6,32,32)
    return out[:, :, PAD:-PAD, PAD:-PAD]                               # (B,6,28,28)


def reference_forward(x, weights, biases):
    """Pure-JAX mirror of the PyTorch forward (for verification)."""
    B = x.shape[0]
    x1 = x[:, :1].astype(jnp.float32)
    x_tmp = jnp.pad(x1, ((0, 0), (0, 0), (PAD, PAD), (PAD, PAD)))      # (B,1,32,32)
    outs = []
    for o in range(N_OUT):
        fc = jax.lax.conv_general_dilated(
            x_tmp, weights[o][:, None],                                # (25,1,5,5)
            window_strides=(1, 1), padding=((PAD, PAD), (PAD, PAD)),
            dimension_numbers=('NCHW', 'OIHW', 'NCHW'),
        ) + biases[o][None, :, None, None]                             # (B,25,32,32)
        out = jnp.zeros((B, 1, IMG, IMG), jnp.float32)
        for i in range(K):
            for j in range(K):
                shifted = jnp.pad(
                    x1, ((0, 0), (0, 0), (K - 1 - j, j), (K - 1 - i, i)))
                out = out + shifted * jnp.tanh(fc[:, K * i + j])[:, None]
        outs.append(out[:, 0, PAD:-PAD, PAD:-PAD])
    return jnp.stack(outs, axis=1)                                     # (B,6,28,28)


if __name__ == "__main__":
    key = jax.random.PRNGKey(0)
    kw, kb, kx = jax.random.split(key, 3)
    # Deterministic synthetic parameters: 6 DynamicKernels, each Conv2d(1,25,5).
    weights = jax.random.normal(kw, (N_OUT, KK, K, K), jnp.float32) * 0.2
    biases = jax.random.normal(kb, (N_OUT, KK), jnp.float32) * 0.1
    # Input: the module hard-codes 28x28 spatial and 1 input channel.
    x = jax.random.normal(kx, (2, N_IN, 28, 28), jnp.float32)

    # Small tile at demo size so the multi-step pipelined grid is exercised;
    # at training batch sizes keep the default tile_r=2048 (or up to 8192).
    out = dynamic_layer_forward(x, weights, biases, tile_r=512)
    out = jax.block_until_ready(out)
    assert out.shape == (2, N_OUT, 28, 28)

    ref = jax.block_until_ready(reference_forward(x, weights, biases))
    np.testing.assert_allclose(np.asarray(out), np.asarray(ref),
                               rtol=2e-4, atol=2e-4)
    print("KERNEL_OK")
</pallas_src>

<mosaic_0001>
module attributes {stable_mosaic.version = 11 : i64} {
  func.func @_dynamic_layer_kernel(%arg0: i32, %arg1: memref<512x25xf32, #tpu.memory_space<vmem>>, %arg2: memref<25x150xf32, #tpu.memory_space<vmem>>, %arg3: memref<1x150xf32, #tpu.memory_space<vmem>>, %arg4: memref<25x150xf32, #tpu.memory_space<vmem>>, %arg5: memref<150x6xf32, #tpu.memory_space<vmem>>, %arg6: memref<512x6xf32, #tpu.memory_space<vmem>>) attributes {dimension_semantics = [#tpu.dimension_semantics<parallel>], iteration_bounds = array<i64: 4>, scalar_prefetch = 0 : i64, scratch_operands = 0 : i64, tpu.core_type = #tpu.core_type<tc>, window_params = [{transform_indices = @transform_0, window_bounds = array<i64: 512, 25>}, {pipeline_mode = #tpu.pipeline_mode<synchronous>, transform_indices = @transform_1, window_bounds = array<i64: 25, 150>}, {pipeline_mode = #tpu.pipeline_mode<synchronous>, transform_indices = @transform_2, window_bounds = array<i64: 1, 150>}, {pipeline_mode = #tpu.pipeline_mode<synchronous>, transform_indices = @transform_3, window_bounds = array<i64: 25, 150>}, {pipeline_mode = #tpu.pipeline_mode<synchronous>, transform_indices = @transform_4, window_bounds = array<i64: 150, 6>}, {transform_indices = @transform_5, window_bounds = array<i64: 512, 6>}]} {
    %c0 = arith.constant 0 : index
    %c0_0 = arith.constant 0 : index
    %0 = vector.load %arg1[%c0, %c0_0] : memref<512x25xf32, #tpu.memory_space<vmem>>, vector<512x25xf32>
    %c0_1 = arith.constant 0 : index
    %c0_2 = arith.constant 0 : index
    %1 = vector.load %arg2[%c0_1, %c0_2] : memref<25x150xf32, #tpu.memory_space<vmem>>, vector<25x150xf32>
    %cst = arith.constant dense<0.000000e+00> : vector<512x150xf32>
    %2 = tpu.matmul %0, %1, %cst {dimension_numbers = #tpu.dot_dimension_numbers<[1], [0], [0], [1], [0, 0, 1, 1], [], []>} : vector<512x25xf32>, vector<25x150xf32>, vector<512x150xf32> -> vector<512x150xf32>
    %c0_3 = arith.constant 0 : index
    %c0_4 = arith.constant 0 : index
    %3 = vector.load %arg3[%c0_3, %c0_4] : memref<1x150xf32, #tpu.memory_space<vmem>>, vector<1x150xf32>
    %4 = vector.broadcast %3 : vector<1x150xf32> to vector<512x150xf32>
    %5 = arith.addf %2, %4 : vector<512x150xf32>
    %c0_5 = arith.constant 0 : index
    %c0_6 = arith.constant 0 : index
    %6 = vector.load %arg4[%c0_5, %c0_6] : memref<25x150xf32, #tpu.memory_space<vmem>>, vector<25x150xf32>
    %cst_7 = arith.constant dense<0.000000e+00> : vector<512x150xf32>
    %7 = tpu.matmul %0, %6, %cst_7 {dimension_numbers = #tpu.dot_dimension_numbers<[1], [0], [0], [1], [0, 0, 1, 1], [], []>} : vector<512x25xf32>, vector<25x150xf32>, vector<512x150xf32> -> vector<512x150xf32>
    %8 = math.tanh %5 : vector<512x150xf32>
    %9 = arith.mulf %7, %8 : vector<512x150xf32>
    %c0_8 = arith.constant 0 : index
    %c0_9 = arith.constant 0 : index
    %10 = vector.load %arg5[%c0_8, %c0_9] : memref<150x6xf32, #tpu.memory_space<vmem>>, vector<150x6xf32>
    %cst_10 = arith.constant dense<0.000000e+00> : vector<512x6xf32>
    %11 = tpu.matmul %9, %10, %cst_10 {dimension_numbers = #tpu.dot_dimension_numbers<[1], [0], [0], [1], [0, 0, 1, 1], [], []>} : vector<512x150xf32>, vector<150x6xf32>, vector<512x6xf32> -> vector<512x6xf32>
    %c0_11 = arith.constant 0 : index
    %c0_12 = arith.constant 0 : index
    %12 = vector.load %arg6[%c0_11, %c0_12] : memref<512x6xf32, #tpu.memory_space<vmem>>, vector<512x6xf32>
    tpu.vector_store %arg6[%c0_11, %c0_12], %11 {strides = array<i32>} : memref<512x6xf32, #tpu.memory_space<vmem>>, vector<512x6xf32>,
    return
  }
  func.func @transform_0(%arg0: i32) -> (i32, i32) {
    %c0_i32 = arith.constant 0 : i32
    %c0_i32_0 = arith.constant 0 : i32
    return %arg0, %c0_i32 : i32, i32
  }
  func.func @transform_1(%arg0: i32) -> (i32, i32) {
    %c0_i32 = arith.constant 0 : i32
    %c0_i32_0 = arith.constant 0 : i32
    %c0_i32_1 = arith.constant 0 : i32
    return %c0_i32, %c0_i32_0 : i32, i32
  }
  func.func @transform_2(%arg0: i32) -> (i32, i32) {
    %c0_i32 = arith.constant 0 : i32
    %c0_i32_0 = arith.constant 0 : i32
    %c0_i32_1 = arith.constant 0 : i32
    return %c0_i32, %c0_i32_0 : i32, i32
  }
  func.func @transform_3(%arg0: i32) -> (i32, i32) {
    %c0_i32 = arith.constant 0 : i32
    %c0_i32_0 = arith.constant 0 : i32
    %c0_i32_1 = arith.constant 0 : i32
    return %c0_i32, %c0_i32_0 : i32, i32
  }
  func.func @transform_4(%arg0: i32) -> (i32, i32) {
    %c0_i32 = arith.constant 0 : i32
    %c0_i32_0 = arith.constant 0 : i32
    %c0_i32_1 = arith.constant 0 : i32
    return %c0_i32, %c0_i32_0 : i32, i32
  }
  func.func @transform_5(%arg0: i32) -> (i32, i32) {
    %c0_i32 = arith.constant 0 : i32
    %c0_i32_0 = arith.constant 0 : i32
    return %arg0, %c0_i32 : i32, i32
  }
}

</mosaic_0001>

<bundles_post_ra>
// kernel: tpu_custom_call.1
= control target key start
LH: loop header
LB: loop body
LE: loop exit
PB: predicated region body
PF: predicated region fallthrough
CT: control target
= control target key end

     0   :  { %s3045_s18 = smov 0   ;;  %s4439_s0 = inlined_call_operand.vmem [shape: f32[2048,25], index: 0, kind: input, shape index: {}]   ;;  %s4440_s1 = inlined_call_operand.vmem [shape: f32[25,150], index: 1, kind: input, shape index: {}]   ;;  %s4441_s2 = inlined_call_operand.vmem [shape: f32[1,150], index: 2, kind: input, shape index: {}]   ;;  %s4442_s3 = inlined_call_operand.vmem [shape: f32[25,150], index: 3, kind: input, shape index: {}]   ;;  %s4443_s4 = inlined_call_operand.vmem [shape: f32[150,6], index: 4, kind: input, shape index: {}]   ;;  %s4444_s5 = inlined_call_operand.vmem [shape: f32[2048,6], index: 5, kind: output, shape index: {}]  }
   0x1 LB: > { %s2367_s19 = sadd.s32 4294967295, %s3013_s18   ;;  %p2371_p0 = scmp.ge.s32.totalorder %s3013_s18, 1  ;;  %s3013_s18 = sphi %s3045_s18, %s15_s18  }
   0x2   : > { %p188_p1 = scmp.lt.s32.totalorder %s3013_s18, 5 }
   0x4   : > { %p189_p2 = pnand %p2371_p0, %p188_p1 }
   0x6   : > { %192 = sbr.rel (%p189_p2) target bundleno = 1043 (0x413), region = 40 }
   0xb   : > { %v298_v0 = vld [vmem:[%s4440_s1 + $0x30] sm:$0x1]  ;;  %vm499_vm0 = vcmask 1040384   ;;  %v299_v1 = vld [vmem:[%s4440_s1 + $0x38] sm:$0x1]  ;;  %v296_v2 = vld [vmem:[%s4440_s1 + $0x20] sm:$0xff] }
   0xc   : > { %2703 = vmatpush.msk.msra.mxu2 %vm499_vm0, %v298_v0  ;;  %2707 = vmatpush.msk.msra.mxu3 %vm499_vm0, %v299_v1  ;;  %v297_v3 = vld [vmem:[%s4440_s1 + $0x28] sm:$0xff]  ;;  %s2372_s28 = sshll.u32 %s2367_s19, 6  ;;  %v294_v4 = vld [vmem:[%s4440_s1 + $0x10] sm:$0xff]  ;;  %v295_v5 = vld [vmem:[%s4440_s1 + $0x18] sm:$0xff]  ;;  %vm306_vm1 = vcmask 203776   ;;  %vm1824_vm2 = vcmask 1045504  }
   0xd   : > { %p217_p3 = scmp.lt.s32.totalorder %s2372_s28, 255  ;;  %2376 = vmatpush.msk.msra.mxu0 %vm499_vm0, %v298_v0  ;;  %2441 = vmatpush.msk.msra.mxu1 %vm499_vm0, %v299_v1  ;;  %v292_v6 = vld [vmem:[%s4440_s1] sm:$0xff]  ;;  %v293_v7 = vld [vmem:[%s4440_s1 + $0x8] sm:$0xff]  ;;  %v930_v8 = vld [vmem:[%s4442_s3 + $0x30] sm:$0x1]  ;;  %vm1631_vm3 = vcmask 179200  }
   0xe   : > { %2704 = vmatpush.msra.mxu2 %v296_v2  ;;  %2708 = vmatpush.msra.mxu3 %v297_v3  ;;  %v931_v9 = vld [vmem:[%s4442_s3 + $0x38] sm:$0x1]  ;;  %v928_v15 = vld [vmem:[%s4442_s3 + $0x20] sm:$0xff]  ;;  %v929_v16 = vld [vmem:[%s4442_s3 + $0x28] sm:$0xff]  ;;  %vm2246_vm4 = vcmask 48128  }
   0xf   : > { %s4574_s28 = smov (!%p217_p3, %s2372_s28), 255  ;;  %519 = vmatpush.msra.mxu0 %v296_v2  ;;  %728 = vmatpush.msra.mxu1 %v297_v3  ;;  %v926_v25 = vld [vmem:[%s4442_s3 + $0x10] sm:$0xff]  ;;  %v927_v26 = vld [vmem:[%s4442_s3 + $0x18] sm:$0xff]  ;;  %v1625_v42 = vld [vmem:[%s4443_s4 + $0x68] sm:$0xff] }
  0x10   : > { %2705 = vmatpush.msra.mxu2 %v294_v4  ;;  %2709 = vmatpush.msra.mxu3 %v295_v5  ;;  %s2373_s16 = sshll.u32 %s4574_s28, 3  ;;  %v1627_v29 = vld [vmem:[%s4443_s4 + $0x78] sm:$0xff]  ;;  %v1630_v30 = vld [vmem:[%s4443_s4 + $0x90] sm:$0x3f]  ;;  %v1624_v51 = vld [vmem:[%s4443_s4 + $0x60] sm:$0xff] }
  0x11   : > { %520 = vmatpush.msra.mxu0 %v294_v4  ;;  %729 = vmatpush.msra.mxu1 %v295_v5  ;;  %s3095_s20 = scalar_lea.vmem %s4439_s0, %s2373_s16  ;;  %v1626_v35 = vld [vmem:[%s4443_s4 + $0x70] sm:$0xff]  ;;  %v924_v56 = vld [vmem:[%s4442_s3] sm:$0xff]  ;;  %v925_v57 = vld [vmem:[%s4442_s3 + $0x8] sm:$0xff]  ;;  %s3981_s9 = scalar_lea.vmem %s4444_s5, %s2373_s16 }
  0x12   : > { %2706 = vmatpush.msra.mxu2 %v292_v6  ;;  %2710 = vmatpush.msra.mxu3 %v293_v7  ;;  %v260_v10 = vld [vmem:[%s3095_s20 + $0x100] sm:$0xff]  ;;  %v261_v11 = vld [vmem:[%s3095_s20 + $0x108] sm:$0xff]  ;;  %v262_v12 = vld [vmem:[%s3095_s20 + $0x110] sm:$0xff] }
  0x13   : > { %2409 = vmatmul.msk.f32.vlgmr.msra.gmra.mxu2 %vm306_vm1, %v260_v10  ;;  %2474 = vmatmul.msk.f32.vlgmr.msra.gmra.mxu3 %vm306_vm1, %v260_v10  ;;  %v263_v13 = vld [vmem:[%s3095_s20 + $0x118] sm:$0xff]  ;;  %v264_v14 = vld [vmem:[%s3095_s20 + $0x120] sm:$0xff]  ;;  %v265_v17 = vld [vmem:[%s3095_s20 + $0x128] sm:$0xff] }
  0x14   : > { %2506 = vmatpush.msk.msrb.mxu2 %vm499_vm0, %v930_v8  ;;  %2571 = vmatpush.msk.msrb.mxu3 %vm499_vm0, %v931_v9  ;;  %v266_v18 = vld [vmem:[%s3095_s20 + $0x130] sm:$0xff]  ;;  %v267_v19 = vld [vmem:[%s3095_s20 + $0x138] sm:$0xff]  ;;  %v268_v20 = vld [vmem:[%s3095_s20 + $0x140] sm:$0xff] }
  0x15   : > { %521 = vmatpush.msra.mxu0 %v292_v6  ;;  %730 = vmatpush.msra.mxu1 %v293_v7  ;;  %v269_v21 = vld [vmem:[%s3095_s20 + $0x148] sm:$0xff]  ;;  %v270_v22 = vld [vmem:[%s3095_s20 + $0x150] sm:$0xff]  ;;  %v271_v23 = vld [vmem:[%s3095_s20 + $0x158] sm:$0xff] }
  0x16   : > { %951 = vmatpush.msrb.mxu2 %v928_v15  ;;  %1160 = vmatpush.msrb.mxu3 %v929_v16  ;;  %v272_v24 = vld [vmem:[%s3095_s20 + $0x160] sm:$0xff]  ;;  %v273_v27 = vld [vmem:[%s3095_s20 + $0x168] sm:$0xff]  ;;  %v274_v31 = vld [vmem:[%s3095_s20 + $0x170] sm:$0xff] }
  0x17   : > { %v3152_v28 = vld [vmem:[%s3095_s20] sm:$0xff]  ;;  %1828 = vmatpush.msrb.mxu0 %v1627_v29  ;;  %2636 = vmatpush.msk.msrb.mxu1 %vm1824_vm2, %v1630_v30  ;;  %v3168_v32 = vld [vmem:[%s3095_s20 + $0x8] sm:$0xff]  ;;  %v275_v33 = vld [vmem:[%s3095_s20 + $0x178] sm:$0xff] }
  0x18   : > { %952 = vmatpush.msrb.mxu2 %v926_v25  ;;  %1161 = vmatpush.msrb.mxu3 %v927_v26  ;;  %v3178_v34 = vld [vmem:[%s3095_s20 + $0x10] sm:$0xff]  ;;  %v276_v36 = vld [vmem:[%s3095_s20 + $0x180] sm:$0xff]  ;;  %v3191_v37 = vld [vmem:[%s3095_s20 + $0x18] sm:$0xff] }
  0x19   : > { %2377 = vmatmul.msk.f32.vlgmr.msra.gmra.mxu0 %vm306_vm1, %v3152_v28  ;;  %2442 = vmatmul.msk.f32.vlgmr.msra.gmra.mxu1 %vm306_vm1, %v3152_v28  ;;  %v277_v40 = vld [vmem:[%s3095_s20 + $0x188] sm:$0xff]  ;;  %v3205_v41 = vld [vmem:[%s3095_s20 + $0x20] sm:$0xff]  ;;  %v278_v45 = vld [vmem:[%s3095_s20 + $0x190] sm:$0xff] }
  0x1a   : > { %1829 = vmatpush.msrb.mxu0 %v1626_v35  ;;  %v3222_v46 = vld [vmem:[%s3095_s20 + $0x28] sm:$0xff]  ;;  %v279_v49 = vld [vmem:[%s3095_s20 + $0x198] sm:$0xff]  ;;  %v3236_v50 = vld [vmem:[%s3095_s20 + $0x30] sm:$0xff]  ;;  %953 = vmatpush.msrb.mxu2 %v924_v56 }
  0x1b   : > { %2410 = vmatmul.msk.f32.gmra.mxu2 %vm306_vm1, %v261_v11  ;;  %2475 = vmatmul.msk.f32.gmra.mxu3 %vm306_vm1, %v261_v11  ;;  %v280_v54 = vld [vmem:[%s3095_s20 + $0x1a0] sm:$0xff]  ;;  %v3253_v55 = vld [vmem:[%s3095_s20 + $0x38] sm:$0xff]  ;;  %v281_v60 = vld [vmem:[%s3095_s20 + $0x1a8] sm:$0xff] }
  0x1c   : > { %1830 = vmatpush.msrb.mxu0 %v1625_v42  ;;  %1162 = vmatpush.msrb.mxu3 %v925_v57  ;;  %v3273_v61 = vld [vmem:[%s3095_s20 + $0x40] sm:$0xff]  ;;  %v1623_v62 = vld [vmem:[%s4443_s4 + $0x58] sm:$0xff]  ;;  %v282_v1 = vld [vmem:[%s3095_s20 + $0x1b0] sm:$0xff] }
  0x1d   : > { %v3290_v2 = vld [vmem:[%s3095_s20 + $0x48] sm:$0xff]  ;;  %v283_v5 = vld [vmem:[%s3095_s20 + $0x1b8] sm:$0xff]  ;;  %v3304_v6 = vld [vmem:[%s3095_s20 + $0x50] sm:$0xff] }
  0x1e   : > { %1831 = vmatpush.msrb.mxu0 %v1624_v51  ;;  %v1622_v7 = vld [vmem:[%s4443_s4 + $0x50] sm:$0xff]  ;;  %v284_v10 = vld [vmem:[%s3095_s20 + $0x1c0] sm:$0xff]  ;;  %v3321_v11 = vld [vmem:[%s3095_s20 + $0x58] sm:$0xff] }
  0x1f   : > { %v285_v15 = vld [vmem:[%s3095_s20 + $0x1c8] sm:$0xff]  ;;  %v3338_v16 = vld [vmem:[%s3095_s20 + $0x60] sm:$0xff]  ;;  %v3369_v25 = vld [vmem:[%s3095_s20 + $0x70] sm:$0xff] }
  0x20   : > { %1832 = vmatpush.msrb.mxu0 %v1623_v62  ;;  %v1620_v26 = vld [vmem:[%s4443_s4 + $0x40] sm:$0xff]  ;;  %v289_v42 = vld [vmem:[%s3095_s20 + $0x1e8] sm:$0xff] }
  0x21   : > { %2378 = vmatmul.msk.f32.gmra.mxu0 %vm306_vm1, %v3168_v32  ;;  %2443 = vmatmul.msk.f32.gmra.mxu1 %vm306_vm1, %v3168_v32  ;;  %v288_v30 = vld [vmem:[%s3095_s20 + $0x1e0] sm:$0xff]  ;;  %v3425_v62 = vld [vmem:[%s3095_s20 + $0x88] sm:$0xff] }
  0x22   : > { %1833 = vmatpush.msrb.mxu0 %v1622_v7 }
  0x23   : > { %2411 = vmatmul.msk.f32.gmra.mxu2 %vm306_vm1, %v262_v12  ;;  %2476 = vmatmul.msk.f32.gmra.mxu3 %vm306_vm1, %v262_v12  ;;  %v1629_v12 = vld [vmem:[%s4443_s4 + $0x88] sm:$0xff] }
  0x24   : > { %2051 = vmatpush.msrb.mxu1 %v1629_v12  ;;  %v291_v12 = vld [vmem:[%s3095_s20 + $0x1f8] sm:$0xff] }
  0x29   : > { %2379 = vmatmul.msk.f32.gmra.mxu0 %vm306_vm1, %v3178_v34  ;;  %2444 = vmatmul.msk.f32.gmra.mxu1 %vm306_vm1, %v3178_v34 }
  0x2b   : > { %2412 = vmatmul.msk.f32.gmra.mxu2 %vm306_vm1, %v263_v13  ;;  %2477 = vmatmul.msk.f32.gmra.mxu3 %vm306_vm1, %v263_v13 }
  0x31   : > { %2380 = vmatmul.msk.f32.gmra.mxu0 %vm306_vm1, %v3191_v37  ;;  %2445 = vmatmul.msk.f32.gmra.mxu1 %vm306_vm1, %v3191_v37 }
  0x33   : > { %2413 = vmatmul.msk.f32.gmra.mxu2 %vm306_vm1, %v264_v14  ;;  %2478 = vmatmul.msk.f32.gmra.mxu3 %vm306_vm1, %v264_v14 }
  0x39   : > { %2381 = vmatmul.msk.f32.gmra.mxu0 %vm306_vm1, %v3205_v41  ;;  %2446 = vmatmul.msk.f32.gmra.mxu1 %vm306_vm1, %v3205_v41 }
  0x3b   : > { %2414 = vmatmul.msk.f32.gmra.mxu2 %vm306_vm1, %v265_v17  ;;  %2479 = vmatmul.msk.f32.gmra.mxu3 %vm306_vm1, %v265_v17  ;;  %v1621_v17 = vld [vmem:[%s4443_s4 + $0x48] sm:$0xff] }
  0x3c   : > { %1834 = vmatpush.msrb.mxu0 %v1621_v17  ;;  %v1618_v17 = vld [vmem:[%s4443_s4 + $0x30] sm:$0xff] }
  0x3e   : > { %1835 = vmatpush.msrb.mxu0 %v1620_v26 }
  0x41   : > { %2382 = vmatmul.msk.f32.gmra.mxu0 %vm306_vm1, %v3222_v46  ;;  %2447 = vmatmul.msk.f32.gmra.mxu1 %vm306_vm1, %v3222_v46 }
  0x43   : > { %2415 = vmatmul.msk.f32.gmra.mxu2 %vm306_vm1, %v266_v18  ;;  %2480 = vmatmul.msk.f32.gmra.mxu3 %vm306_vm1, %v266_v18 }
  0x49   : > { %2383 = vmatmul.msk.f32.gmra.mxu0 %vm306_vm1, %v3236_v50  ;;  %2448 = vmatmul.msk.f32.gmra.mxu1 %vm306_vm1, %v3236_v50 }
  0x4b   : > { %2416 = vmatmul.msk.f32.gmra.mxu2 %vm306_vm1, %v267_v19  ;;  %2481 = vmatmul.msk.f32.gmra.mxu3 %vm306_vm1, %v267_v19 }
  0x51   : > { %2384 = vmatmul.msk.f32.gmra.mxu0 %vm306_vm1, %v3253_v55  ;;  %2449 = vmatmul.msk.f32.gmra.mxu1 %vm306_vm1, %v3253_v55 }
  0x53   : > { %2417 = vmatmul.msk.f32.gmra.mxu2 %vm306_vm1, %v268_v20  ;;  %2482 = vmatmul.msk.f32.gmra.mxu3 %vm306_vm1, %v268_v20  ;;  %v286_v20 = vld [vmem:[%s3095_s20 + $0x1d0] sm:$0xff] }
  0x59   : > { %2385 = vmatmul.msk.f32.gmra.mxu0 %vm306_vm1, %v3273_v61  ;;  %2450 = vmatmul.msk.f32.gmra.mxu1 %vm306_vm1, %v3273_v61 }
  0x5b   : > { %2418 = vmatmul.msk.f32.gmra.mxu2 %vm306_vm1, %v269_v21  ;;  %2483 = vmatmul.msk.f32.gmra.mxu3 %vm306_vm1, %v269_v21  ;;  %v3355_v21 = vld [vmem:[%s3095_s20 + $0x68] sm:$0xff] }
  0x61   : > { %2386 = vmatmul.msk.f32.gmra.mxu0 %vm306_vm1, %v3290_v2  ;;  %2451 = vmatmul.msk.f32.gmra.mxu1 %vm306_vm1, %v3290_v2 }
  0x63   : > { %2419 = vmatmul.msk.f32.gmra.mxu2 %vm306_vm1, %v270_v22  ;;  %2484 = vmatmul.msk.f32.gmra.mxu3 %vm306_vm1, %v270_v22 }
  0x69   : > { %2387 = vmatmul.msk.f32.gmra.mxu0 %vm306_vm1, %v3304_v6  ;;  %2452 = vmatmul.msk.f32.gmra.mxu1 %vm306_vm1, %v3304_v6 }
  0x6b   : > { %2420 = vmatmul.msk.f32.gmra.mxu2 %vm306_vm1, %v271_v23  ;;  %2485 = vmatmul.msk.f32.gmra.mxu3 %vm306_vm1, %v271_v23 }
  0x71   : > { %2388 = vmatmul.msk.f32.gmra.mxu0 %vm306_vm1, %v3321_v11  ;;  %2453 = vmatmul.msk.f32.gmra.mxu1 %vm306_vm1, %v3321_v11 }
  0x73   : > { %2421 = vmatmul.msk.f32.gmra.mxu2 %vm306_vm1, %v272_v24  ;;  %2486 = vmatmul.msk.f32.gmra.mxu3 %vm306_vm1, %v272_v24  ;;  %v287_v24 = vld [vmem:[%s3095_s20 + $0x1d8] sm:$0xff] }
  0x79   : > { %2389 = vmatmul.msk.f32.gmra.mxu0 %vm306_vm1, %v3338_v16  ;;  %2454 = vmatmul.msk.f32.gmra.mxu1 %vm306_vm1, %v3338_v16 }
  0x7b   : > { %2422 = vmatmul.msk.f32.gmra.mxu2 %vm306_vm1, %v273_v27  ;;  %2487 = vmatmul.msk.f32.gmra.mxu3 %vm306_vm1, %v273_v27 }
  0x81   : > { %2390 = vmatmul.msk.f32.gmra.mxu0 %vm306_vm1, %v3355_v21  ;;  %2455 = vmatmul.msk.f32.gmra.mxu1 %vm306_vm1, %v3355_v21 }
  0x83   : > { %2423 = vmatmul.msk.f32.gmra.mxu2 %vm306_vm1, %v274_v31  ;;  %2488 = vmatmul.msk.f32.gmra.mxu3 %vm306_vm1, %v274_v31  ;;  %v3386_v31 = vld [vmem:[%s3095_s20 + $0x78] sm:$0xff] }
  0x89   : > { %2391 = vmatmul.msk.f32.gmra.mxu0 %vm306_vm1, %v3369_v25  ;;  %2456 = vmatmul.msk.f32.gmra.mxu1 %vm306_vm1, %v3369_v25 }
  0x8b   : > { %2424 = vmatmul.msk.f32.gmra.mxu2 %vm306_vm1, %v275_v33  ;;  %2489 = vmatmul.msk.f32.gmra.mxu3 %vm306_vm1, %v275_v33 }
  0x91   : > { %2392 = vmatmul.msk.f32.gmra.mxu0 %vm306_vm1, %v3386_v31  ;;  %2457 = vmatmul.msk.f32.gmra.mxu1 %vm306_vm1, %v3386_v31 }
  0x93   : > { %2425 = vmatmul.msk.f32.gmra.mxu2 %vm306_vm1, %v276_v36  ;;  %2490 = vmatmul.msk.f32.gmra.mxu3 %vm306_vm1, %v276_v36 }
  0x96   : > { %v3199_v38 = vpop.f32.mrf.mxu2  ;;  %v3201_v39 = vpop.f32.mrf.mxu3 }
  0x97   : > { %4445 = vst [vmem:[#allocation2_spill] sm:$0xff] %v3199_v38  ;;  %v3398_v36 = vpop.f32.mrf.mxu0 }
  0x98   : > { %4446 = vst [vmem:[#allocation3_spill] sm:$0xff] %v3201_v39 }
  0x9b   : > { %2426 = vmatmul.msk.f32.gmra.mxu2 %vm306_vm1, %v277_v40  ;;  %2491 = vmatmul.msk.f32.gmra.mxu3 %vm306_vm1, %v277_v40  ;;  %v3400_v40 = vpop.f32.mrf.mxu1 }
  0x9e   : > { %v3216_v43 = vpop.f32.mrf.mxu2  ;;  %v3218_v44 = vpop.f32.mrf.mxu3 }
  0x9f   : > { %4447 = vst [vmem:[#allocation4_spill] sm:$0xff] %v3216_v43  ;;  %v3419_v56 = vpop.f32.mrf.mxu0 }
  0xa0   : > { %4448 = vst [vmem:[#allocation5_spill] sm:$0xff] %v3218_v44 }
  0xa3   : > { %2427 = vmatmul.msk.f32.gmra.mxu2 %vm306_vm1, %v278_v45  ;;  %2492 = vmatmul.msk.f32.gmra.mxu3 %vm306_vm1, %v278_v45  ;;  %v3404_v45 = vld [vmem:[%s3095_s20 + $0x80] sm:$0xff]  ;;  %v3421_v57 = vpop.f32.mrf.mxu1 }
  0xa4   : > { %2393 = vmatmul.msk.f32.gmra.mxu0 %vm306_vm1, %v3404_v45  ;;  %2458 = vmatmul.msk.f32.gmra.mxu1 %vm306_vm1, %v3404_v45 }
  0xa6   : > { %v3230_v47 = vpop.f32.mrf.mxu2  ;;  %v3232_v48 = vpop.f32.mrf.mxu3 }
  0xa7   : > { %4449 = vst [vmem:[#allocation6_spill] sm:$0xff] %v3230_v47  ;;  %v3437_v7 = vpop.f32.mrf.mxu0 }
  0xa8   : > { %4450 = vst [vmem:[#allocation7_spill] sm:$0xff] %v3232_v48 }
  0xab   : > { %2428 = vmatmul.msk.f32.gmra.mxu2 %vm306_vm1, %v279_v49  ;;  %2493 = vmatmul.msk.f32.gmra.mxu3 %vm306_vm1, %v279_v49  ;;  %v1619_v49 = vld [vmem:[%s4443_s4 + $0x38] sm:$0xff] }
  0xac   : > { %1836 = vmatpush.msrb.mxu0 %v1619_v49  ;;  %2459 = vmatmul.msk.f32.gmra.mxu1 %vm306_vm1, %v3425_v62 }
  0xad   : > { %2394 = vmatmul.msk.f32.gmra.mxu0 %vm306_vm1, %v3425_v62 }
  0xae   : > { %v3247_v52 = vpop.f32.mrf.mxu2  ;;  %v3249_v53 = vpop.f32.mrf.mxu3  ;;  %1837 = vmatpush.msrb.mxu0 %v1618_v17 }
  0xaf   : > { %4451 = vst [vmem:[#allocation8_spill] sm:$0xff] %v3247_v52  ;;  %v3458_v26 = vpop.f32.mrf.mxu0 }
  0xb0   : > { %4452 = vst [vmem:[#allocation9_spill] sm:$0xff] %v3249_v53 }
  0xb3   : > { %2429 = vmatmul.msk.f32.gmra.mxu2 %vm306_vm1, %v280_v54  ;;  %2494 = vmatmul.msk.f32.gmra.mxu3 %vm306_vm1, %v280_v54 }
  0xb6   : > { %v3267_v58 = vpop.f32.mrf.mxu2  ;;  %v3269_v59 = vpop.f32.mrf.mxu3 }
  0xb7   : > { %4453 = vst [vmem:[#allocation10_spill] sm:$0xff] %v3267_v58  ;;  %v3712_v58 = vld [vmem:[%s3095_s20 + $0xf8] sm:$0xff] }
  0xb8   : > { %4454 = vst [vmem:[#allocation11_spill] sm:$0xff] %v3269_v59 }
  0xbb   : > { %2430 = vmatmul.msk.f32.gmra.mxu2 %vm306_vm1, %v281_v60  ;;  %2495 = vmatmul.msk.f32.gmra.mxu3 %vm306_vm1, %v281_v60  ;;  %v290_v60 = vld [vmem:[%s3095_s20 + $0x1f0] sm:$0xff] }
  0xbe   : > { %v3284_v63 = vpop.f32.mrf.mxu2  ;;  %v3286_v0 = vpop.f32.mrf.mxu3 }
  0xbf   : > { %4455 = vst [vmem:[#allocation12_spill] sm:$0xff] %v3284_v63 }
  0xc0   : > { %4456 = vst [vmem:[#allocation13_spill] sm:$0xff] %v3286_v0  ;;  %v3690_v0 = vld [vmem:[%s3095_s20 + $0xf0] sm:$0xff] }
  0xc3   : > { %2431 = vmatmul.msk.f32.gmra.mxu2 %vm306_vm1, %v282_v1  ;;  %2496 = vmatmul.msk.f32.gmra.mxu3 %vm306_vm1, %v282_v1 }
  0xc6   : > { %v3298_v3 = vpop.f32.mrf.mxu2  ;;  %v3300_v4 = vpop.f32.mrf.mxu3 }
  0xc7   : > { %4457 = vst [vmem:[#allocation14_spill] sm:$0xff] %v3298_v3  ;;  %v3671_v3 = vld [vmem:[%s3095_s20 + $0xe8] sm:$0xff] }
  0xc8   : > { %4458 = vst [vmem:[#allocation15_spill] sm:$0xff] %v3300_v4 }
  0xcb   : > { %2432 = vmatmul.msk.f32.gmra.mxu2 %vm306_vm1, %v283_v5  ;;  %2497 = vmatmul.msk.f32.gmra.mxu3 %vm306_vm1, %v283_v5 }
  0xce   : > { %v3315_v8 = vpop.f32.mrf.mxu2  ;;  %v3317_v9 = vpop.f32.mrf.mxu3 }
  0xcf   : > { %4459 = vst [vmem:[#allocation16_spill] sm:$0xff] %v3315_v8 }
  0xd0   : > { %4460 = vst [vmem:[#allocation17_spill] sm:$0xff] %v3317_v9  ;;  %v3649_v9 = vld [vmem:[%s3095_s20 + $0xe0] sm:$0xff] }
  0xd3   : > { %2433 = vmatmul.msk.f32.gmra.mxu2 %vm306_vm1, %v284_v10  ;;  %2498 = vmatmul.msk.f32.gmra.mxu3 %vm306_vm1, %v284_v10  ;;  %v3439_v10 = vpop.f32.mrf.mxu1 }
  0xd6   : > { %v3332_v13 = vpop.f32.mrf.mxu2  ;;  %v3334_v14 = vpop.f32.mrf.mxu3 }
  0xd7   : > { %4461 = vst [vmem:[#allocation18_spill] sm:$0xff] %v3332_v13  ;;  %v3630_v13 = vld [vmem:[%s3095_s20 + $0xd8] sm:$0xff] }
  0xd8   : > { %4462 = vst [vmem:[#allocation19_spill] sm:$0xff] %v3334_v14 }
  0xdb   : > { %2434 = vmatmul.msk.f32.gmra.mxu2 %vm306_vm1, %v285_v15  ;;  %2499 = vmatmul.msk.f32.gmra.mxu3 %vm306_vm1, %v285_v15  ;;  %v3443_v15 = vld [vmem:[%s3095_s20 + $0x90] sm:$0xff] }
  0xdc   : > { %2395 = vmatmul.msk.f32.gmra.mxu0 %vm306_vm1, %v3443_v15  ;;  %2460 = vmatmul.msk.f32.gmra.mxu1 %vm306_vm1, %v3443_v15 }
  0xde   : > { %v3349_v18 = vpop.f32.mrf.mxu2  ;;  %v3351_v19 = vpop.f32.mrf.mxu3 }
  0xdf   : > { %4463 = vst [vmem:[#allocation20_spill] sm:$0xff] %v3349_v18 }
  0xe0   : > { %4464 = vst [vmem:[#allocation21_spill] sm:$0xff] %v3351_v19  ;;  %v3608_v19 = vld [vmem:[%s3095_s20 + $0xd0] sm:$0xff] }
  0xe3   : > { %2435 = vmatmul.msk.f32.gmra.mxu2 %vm306_vm1, %v286_v20  ;;  %2500 = vmatmul.msk.f32.gmra.mxu3 %vm306_vm1, %v286_v20 }
  0xe6   : > { %v3363_v22 = vpop.f32.mrf.mxu2  ;;  %v3365_v23 = vpop.f32.mrf.mxu3 }
  0xe7   : > { %4465 = vst [vmem:[#allocation22_spill] sm:$0xff] %v3363_v22  ;;  %v3589_v22 = vld [vmem:[%s3095_s20 + $0xc8] sm:$0xff] }
  0xe8   : > { %4466 = vst [vmem:[#allocation23_spill] sm:$0xff] %v3365_v23 }
  0xeb   : > { %2436 = vmatmul.msk.f32.gmra.mxu2 %vm306_vm1, %v287_v24  ;;  %2501 = vmatmul.msk.f32.gmra.mxu3 %vm306_vm1, %v287_v24 }
  0xee   : > { %v3380_v27 = vpop.f32.mrf.mxu2  ;;  %v3382_v29 = vpop.f32.mrf.mxu3 }
  0xef   : > { %4467 = vst [vmem:[#allocation24_spill] sm:$0xff] %v3380_v27 }
  0xf0   : > { %4468 = vst [vmem:[#allocation25_spill] sm:$0xff] %v3382_v29  ;;  %v3567_v29 = vld [vmem:[%s3095_s20 + $0xc0] sm:$0xff] }
  0xf3   : > { %2437 = vmatmul.msk.f32.gmra.mxu2 %vm306_vm1, %v288_v30  ;;  %2502 = vmatmul.msk.f32.gmra.mxu3 %vm306_vm1, %v288_v30  ;;  %v3460_v30 = vpop.f32.mrf.mxu1 }
  0xf6   : > { %v3394_v33 = vpop.f32.mrf.mxu2  ;;  %v3396_v35 = vpop.f32.mrf.mxu3 }
  0xf7   : > { %4469 = vst [vmem:[#allocation26_spill] sm:$0xff] %v3394_v33  ;;  %v3548_v33 = vld [vmem:[%s3095_s20 + $0xb8] sm:$0xff] }
  0xf8   : > { %4470 = vst [vmem:[#allocation27_spill] sm:$0xff] %v3396_v35 }
  0xfb   : > { %2438 = vmatmul.msk.f32.gmra.mxu2 %vm306_vm1, %v289_v42  ;;  %2503 = vmatmul.msk.f32.gmra.mxu3 %vm306_vm1, %v289_v42  ;;  %v3463_v42 = vld [vmem:[%s3095_s20 + $0x98] sm:$0xff]  ;;  %v3479_v17 = vpop.f32.mrf.mxu1 }
  0xfc   : > { %2396 = vmatmul.msk.f32.gmra.mxu0 %vm306_vm1, %v3463_v42  ;;  %2461 = vmatmul.msk.f32.gmra.mxu1 %vm306_vm1, %v3463_v42 }
  0xfe   : > { %v3415_v51 = vpop.f32.mrf.mxu2  ;;  %v3417_v54 = vpop.f32.mrf.mxu3 }
  0xff   : > { %4471 = vst [vmem:[#allocation28_spill] sm:$0xff] %v3415_v51  ;;  %v3526_v51 = vld [vmem:[%s3095_s20 + $0xb0] sm:$0xff] }
 0x100   : > { %4472 = vst [vmem:[#allocation29_spill] sm:$0xff] %v3417_v54 }
 0x103   : > { %2439 = vmatmul.msk.f32.gmra.mxu2 %vm306_vm1, %v290_v60  ;;  %2504 = vmatmul.msk.f32.gmra.mxu3 %vm306_vm1, %v290_v60 }
 0x106   : > { %v3433_v1 = vpop.f32.mrf.mxu2  ;;  %v3435_v5 = vpop.f32.mrf.mxu3 }
 0x107   : > { %4473 = vst [vmem:[#allocation30_spill] sm:$0xff] %v3433_v1  ;;  %v3504_v1 = vld [vmem:[%s3095_s20 + $0xa8] sm:$0xff] }
 0x108   : > { %4474 = vst [vmem:[#allocation31_spill] sm:$0xff] %v3435_v5  ;;  %v3501_v5 = vpop.f32.mrf.mxu1 }
 0x10b   : > { %2440 = vmatmul.msk.f32.gmra.mxu2 %vm306_vm1, %v291_v12  ;;  %2505 = vmatmul.msk.f32.gmra.mxu3 %vm306_vm1, %v291_v12  ;;  %v3477_v12 = vpop.f32.mrf.mxu0 }
 0x10e   : > { %v3454_v20 = vpop.f32.mrf.mxu2  ;;  %v3456_v24 = vpop.f32.mrf.mxu3 }
 0x10f   : > { %4475 = vst [vmem:[#allocation32_spill] sm:$0xff] %v3454_v20 }
 0x110   : > { %4476 = vst [vmem:[#allocation33_spill] sm:$0xff] %v3456_v24  ;;  %v3482_v24 = vld [vmem:[%s3095_s20 + $0xa0] sm:$0xff]  ;;  %v3523_v54 = vpop.f32.mrf.mxu1 }
 0x111   : > { %2397 = vmatmul.msk.f32.gmra.mxu0 %vm306_vm1, %v3482_v24  ;;  %2462 = vmatmul.msk.f32.gmra.mxu1 %vm306_vm1, %v3482_v24 }
 0x113   : > { %2507 = vmatmul.msk.f32.vlgmr.msrb.gmra.mxu2 %vm306_vm1, %v3152_v28  ;;  %2572 = vmatmul.msk.f32.vlgmr.msrb.gmra.mxu3 %vm306_vm1, %v3152_v28  ;;  %v1617_v28 = vld [vmem:[%s4443_s4 + $0x28] sm:$0xff]  ;;  %v3499_v20 = vpop.f32.mrf.mxu0 }
 0x114   : > { %1838 = vmatpush.msrb.mxu0 %v1617_v28 }
 0x116   : > { %v3473_v49 = vpop.f32.mrf.mxu2  ;;  %v3475_v60 = vpop.f32.mrf.mxu3 }
 0x117   : > { %4477 = vst [vmem:[#allocation34_spill] sm:$0xff] %v3473_v49 }
 0x118   : > { %4478 = vst [vmem:[#allocation35_spill] sm:$0xff] %v3475_v60  ;;  %v3545_v35 = vpop.f32.mrf.mxu1 }
 0x119   : > { %2398 = vmatmul.msk.f32.gmra.mxu0 %vm306_vm1, %v3504_v1  ;;  %2463 = vmatmul.msk.f32.gmra.mxu1 %vm306_vm1, %v3504_v1 }
 0x11b   : > { %2508 = vmatmul.msk.f32.gmra.mxu2 %vm306_vm1, %v3168_v32  ;;  %2573 = vmatmul.msk.f32.gmra.mxu3 %vm306_vm1, %v3168_v32  ;;  %v1628_v32 = vld [vmem:[%s4443_s4 + $0x80] sm:$0xff] }
 0x11c   : > { %2052 = vmatpush.msrb.mxu1 %v1628_v32 }
 0x11e   : > { %v3495_v60 = vpop.f32.mrf.mxu2  ;;  %v3497_v49 = vpop.f32.mrf.mxu3 }
 0x11f   : > { %4479 = vst [vmem:[#allocation36_spill] sm:$0xff] %v3495_v60  ;;  %v3521_v60 = vpop.f32.mrf.mxu0 }
 0x120   : > { %4480 = vst [vmem:[#allocation37_spill] sm:$0xff] %v3497_v49 }
 0x121   : > { %2399 = vmatmul.msk.f32.gmra.mxu0 %vm306_vm1, %v3526_v51  ;;  %2464 = vmatmul.msk.f32.gmra.mxu1 %vm306_vm1, %v3526_v51 }
 0x123   : > { %2509 = vmatmul.msk.f32.gmra.mxu2 %vm306_vm1, %v3178_v34  ;;  %2574 = vmatmul.msk.f32.gmra.mxu3 %vm306_vm1, %v3178_v34  ;;  %v1616_v34 = vld [vmem:[%s4443_s4 + $0x20] sm:$0xff] }
 0x124   : > { %1839 = vmatpush.msrb.mxu0 %v1616_v34 }
 0x126   : > { %v3517_v28 = vpop.f32.mrf.mxu2  ;;  %v3519_v49 = vpop.f32.mrf.mxu3 }
 0x127   : > { %4481 = vst [vmem:[#allocation38_spill] sm:$0xff] %v3517_v28  ;;  %v3543_v28 = vpop.f32.mrf.mxu0 }
 0x128   : > { %4482 = vst [vmem:[#allocation39_spill] sm:$0xff] %v3519_v49 }
 0x129   : > { %2400 = vmatmul.msk.f32.gmra.mxu0 %vm306_vm1, %v3548_v33  ;;  %2465 = vmatmul.msk.f32.gmra.mxu1 %vm306_vm1, %v3548_v33 }
 0x12b   : > { %2510 = vmatmul.msk.f32.gmra.mxu2 %vm306_vm1, %v3191_v37  ;;  %2575 = vmatmul.msk.f32.gmra.mxu3 %vm306_vm1, %v3191_v37 }
 0x12e   : > { %v3539_v32 = vpop.f32.mrf.mxu2  ;;  %v3541_v49 = vpop.f32.mrf.mxu3 }
 0x12f   : > { %4483 = vst [vmem:[#allocation40_spill] sm:$0xff] %v3539_v32  ;;  %v3564_v32 = vpop.f32.mrf.mxu1 }
 0x130   : > { %4484 = vst [vmem:[#allocation41_spill] sm:$0xff] %v3541_v49  ;;  %v3562_v49 = vpop.f32.mrf.mxu0 }
 0x131   : > { %2401 = vmatmul.msk.f32.gmra.mxu0 %vm306_vm1, %v3567_v29  ;;  %2466 = vmatmul.msk.f32.gmra.mxu1 %vm306_vm1, %v3567_v29 }
 0x133   : > { %2511 = vmatmul.msk.f32.gmra.mxu2 %vm306_vm1, %v3205_v41  ;;  %2576 = vmatmul.msk.f32.gmra.mxu3 %vm306_vm1, %v3205_v41  ;;  %v1615_v41 = vld [vmem:[%s4443_s4 + $0x18] sm:$0xff] }
 0x134   : > { %1840 = vmatpush.msrb.mxu0 %v1615_v41 }
 0x136   : > { %v3558_v37 = vpop.f32.mrf.mxu2  ;;  %v3560_v34 = vpop.f32.mrf.mxu3 }
 0x137   : > { %4485 = vst [vmem:[#allocation42_spill] sm:$0xff] %v3558_v37  ;;  %v3586_v23 = vpop.f32.mrf.mxu1 }
 0x138   : > { %4486 = vst [vmem:[#allocation43_spill] sm:$0xff] %v3560_v34  ;;  %v3584_v27 = vpop.f32.mrf.mxu0 }
 0x139   : > { %2402 = vmatmul.msk.f32.gmra.mxu0 %vm306_vm1, %v3589_v22  ;;  %2467 = vmatmul.msk.f32.gmra.mxu1 %vm306_vm1, %v3589_v22 }
 0x13b   : > { %2512 = vmatmul.msk.f32.gmra.mxu2 %vm306_vm1, %v3222_v46  ;;  %2577 = vmatmul.msk.f32.gmra.mxu3 %vm306_vm1, %v3222_v46 }
 0x13e   : > { %v3580_v34 = vpop.f32.mrf.mxu2  ;;  %v3582_v37 = vpop.f32.mrf.mxu3 }
 0x13f   : > { %4487 = vst [vmem:[#allocation44_spill] sm:$0xff] %v3580_v34  ;;  %v3605_v34 = vpop.f32.mrf.mxu1 }
 0x140   : > { %4488 = vst [vmem:[#allocation45_spill] sm:$0xff] %v3582_v37  ;;  %v3603_v37 = vpop.f32.mrf.mxu0 }
 0x141   : > { %2403 = vmatmul.msk.f32.gmra.mxu0 %vm306_vm1, %v3608_v19  ;;  %2468 = vmatmul.msk.f32.gmra.mxu1 %vm306_vm1, %v3608_v19 }
 0x143   : > { %2513 = vmatmul.msk.f32.gmra.mxu2 %vm306_vm1, %v3236_v50  ;;  %2578 = vmatmul.msk.f32.gmra.mxu3 %vm306_vm1, %v3236_v50  ;;  %v1614_v50 = vld [vmem:[%s4443_s4 + $0x10] sm:$0xff] }
 0x144   : > { %1841 = vmatpush.msrb.mxu0 %v1614_v50 }
 0x146   : > { %v3599_v46 = vpop.f32.mrf.mxu2  ;;  %v3601_v41 = vpop.f32.mrf.mxu3 }
 0x147   : > { %4489 = vst [vmem:[#allocation46_spill] sm:$0xff] %v3599_v46  ;;  %v3627_v14 = vpop.f32.mrf.mxu1 }
 0x148   : > { %4490 = vst [vmem:[#allocation47_spill] sm:$0xff] %v3601_v41  ;;  %v3625_v18 = vpop.f32.mrf.mxu0 }
 0x149   : > { %2404 = vmatmul.msk.f32.gmra.mxu0 %vm306_vm1, %v3630_v13  ;;  %2469 = vmatmul.msk.f32.gmra.mxu1 %vm306_vm1, %v3630_v13 }
 0x14b   : > { %2514 = vmatmul.msk.f32.gmra.mxu2 %vm306_vm1, %v3253_v55  ;;  %2579 = vmatmul.msk.f32.gmra.mxu3 %vm306_vm1, %v3253_v55 }
 0x14e   : > { %v3621_v41 = vpop.f32.mrf.mxu2  ;;  %v3623_v46 = vpop.f32.mrf.mxu3 }
 0x14f   : > { %4491 = vst [vmem:[#allocation48_spill] sm:$0xff] %v3621_v41  ;;  %v3646_v41 = vpop.f32.mrf.mxu1 }
 0x150   : > { %4492 = vst [vmem:[#allocation49_spill] sm:$0xff] %v3623_v46  ;;  %v3644_v46 = vpop.f32.mrf.mxu0 }
 0x151   : > { %2405 = vmatmul.msk.f32.gmra.mxu0 %vm306_vm1, %v3649_v9  ;;  %2470 = vmatmul.msk.f32.gmra.mxu1 %vm306_vm1, %v3649_v9 }
 0x153   : > { %2515 = vmatmul.msk.f32.gmra.mxu2 %vm306_vm1, %v3273_v61  ;;  %2580 = vmatmul.msk.f32.gmra.mxu3 %vm306_vm1, %v3273_v61  ;;  %v1613_v61 = vld [vmem:[%s4443_s4 + $0x8] sm:$0xff] }
 0x154   : > { %1842 = vmatpush.msrb.mxu0 %v1613_v61 }
 0x156   : > { %v3640_v55 = vpop.f32.mrf.mxu2  ;;  %v3642_v50 = vpop.f32.mrf.mxu3 }
 0x157   : > { %4493 = vst [vmem:[#allocation50_spill] sm:$0xff] %v3640_v55  ;;  %v3668_v4 = vpop.f32.mrf.mxu1 }
 0x158   : > { %4494 = vst [vmem:[#allocation51_spill] sm:$0xff] %v3642_v50  ;;  %v3666_v8 = vpop.f32.mrf.mxu0 }
 0x159   : > { %2406 = vmatmul.msk.f32.gmra.mxu0 %vm306_vm1, %v3671_v3  ;;  %2471 = vmatmul.msk.f32.gmra.mxu1 %vm306_vm1, %v3671_v3 }
 0x15b   : > { %2516 = vmatmul.msk.f32.gmra.mxu2 %vm306_vm1, %v3290_v2  ;;  %2581 = vmatmul.msk.f32.gmra.mxu3 %vm306_vm1, %v3290_v2 }
 0x15e   : > { %v3662_v50 = vpop.f32.mrf.mxu2  ;;  %v3664_v55 = vpop.f32.mrf.mxu3 }
 0x15f   : > { %4495 = vst [vmem:[#allocation52_spill] sm:$0xff] %v3662_v50  ;;  %v3687_v50 = vpop.f32.mrf.mxu1 }
 0x160   : > { %4496 = vst [vmem:[#allocation53_spill] sm:$0xff] %v3664_v55  ;;  %v3685_v55 = vpop.f32.mrf.mxu0 }
 0x161   : > { %2407 = vmatmul.msk.f32.gmra.mxu0 %vm306_vm1, %v3690_v0  ;;  %2472 = vmatmul.msk.f32.gmra.mxu1 %vm306_vm1, %v3690_v0 }
 0x163   : > { %2517 = vmatmul.msk.f32.gmra.mxu2 %vm306_vm1, %v3304_v6  ;;  %2582 = vmatmul.msk.f32.gmra.mxu3 %vm306_vm1, %v3304_v6  ;;  %v1612_v6 = vld [vmem:[%s4443_s4] sm:$0xff] }
 0x164   : > { %1843 = vmatpush.msrb.mxu0 %v1612_v6 }
 0x166   : > { %v3681_v2 = vpop.f32.mrf.mxu2  ;;  %v3683_v61 = vpop.f32.mrf.mxu3 }
 0x167   : > { %4497 = vst [vmem:[#allocation54_spill] sm:$0xff] %v3681_v2  ;;  %v3709_v59 = vpop.f32.mrf.mxu1 }
 0x168   : > { %4498 = vst [vmem:[#allocation55_spill] sm:$0xff] %v3683_v61  ;;  %v3707_v63 = vpop.f32.mrf.mxu0 }
 0x169   : > { %2408 = vmatmul.msk.f32.gmra.mxu0 %vm306_vm1, %v3712_v58  ;;  %2473 = vmatmul.msk.f32.gmra.mxu1 %vm306_vm1, %v3712_v58 }
 0x16b   : > { %2518 = vmatmul.msk.f32.gmra.mxu2 %vm306_vm1, %v3321_v11  ;;  %2583 = vmatmul.msk.f32.gmra.mxu3 %vm306_vm1, %v3321_v11 }
 0x16e   : > { %v3703_v61 = vpop.f32.mrf.mxu2  ;;  %v3705_v2 = vpop.f32.mrf.mxu3 }
 0x16f   : > { %4499 = vst [vmem:[#allocation56_spill] sm:$0xff] %v3703_v61  ;;  %v3728_v61 = vpop.f32.mrf.mxu1 }
 0x170   : > { %4500 = vst [vmem:[#allocation57_spill] sm:$0xff] %v3705_v2  ;;  %v3726_v2 = vpop.f32.mrf.mxu0 }
 0x173   : > { %2519 = vmatmul.msk.f32.gmra.mxu2 %vm306_vm1, %v3338_v16  ;;  %2584 = vmatmul.msk.f32.gmra.mxu3 %vm306_vm1, %v3338_v16 }
 0x176   : > { %v3722_v11 = vpop.f32.mrf.mxu2  ;;  %v3724_v6 = vpop.f32.mrf.mxu3 }
 0x177   : > { %4501 = vst [vmem:[#allocation58_spill] sm:$0xff] %v3722_v11  ;;  %v3740_v16 = vpop.f32.mrf.mxu1 }
 0x178   : > { %4502 = vst [vmem:[#allocation59_spill] sm:$0xff] %v3724_v6  ;;  %v3738_v48 = vpop.f32.mrf.mxu0  ;;  %v300_v6 = vld [vmem:[%s4441_s2] sm:$0x3] }
 0x17b   : > { %2520 = vmatmul.msk.f32.gmra.mxu2 %vm306_vm1, %v3355_v21  ;;  %2585 = vmatmul.msk.f32.gmra.mxu3 %vm306_vm1, %v3355_v21 }
 0x17e   : > { %v3734_v53 = vpop.f32.mrf.mxu2  ;;  %v3736_v52 = vpop.f32.mrf.mxu3 }
 0x17f   : > { %4503 = vst [vmem:[#allocation60_spill] sm:$0xff] %v3734_v53  ;;  %v3753_v53 = vperm.slane %v300_v6, 0  ;;  %v3765_v44 = vpop.f32.mrf.mxu1 }
 0x180   : > { %4504 = vst [vmem:[#allocation61_spill] sm:$0xff] %v3736_v52  ;;  %v3755_v52 = vperm.slane %v300_v6, 1 }
 0x181   : > { %v524_v47 = vadd.f32 %v3398_v36, %v3753_v53  ;;  %v527_v36 = vadd.f32 %v3419_v56, %v3753_v53 }
 0x183   : > { %2521 = vmatmul.msk.f32.gmra.mxu2 %vm306_vm1, %v3369_v25  ;;  %2586 = vmatmul.msk.f32.gmra.mxu3 %vm306_vm1, %v3369_v25  ;;  %v3763_v25 = vpop.f32.mrf.mxu0  ;;  %2719 = vtanh.f32 %v524_v47 }
 0x186   : > { %v3749_v11 = vpop.f32.mrf.mxu2  ;;  %v3751_v21 = vpop.f32.mrf.mxu3 }
 0x187   : > { %4505 = vst [vmem:[#allocation62_spill] sm:$0xff] %v3749_v11 }
 0x188   : > { %4506 = vst [vmem:[#allocation63_spill] sm:$0xff] %v3751_v21  ;;  %v733_v21 = vadd.f32 %v3400_v40, %v3755_v52 }
 0x189   : > { %v2720_v43 = vpop.eup %2719 }
 0x18a   : > { %2721 = vtanh.f32 %v733_v21 }
 0x18b   : > { %2522 = vmatmul.msk.f32.gmra.mxu2 %vm306_vm1, %v3386_v31  ;;  %2587 = vmatmul.msk.f32.gmra.mxu3 %vm306_vm1, %v3386_v31  ;;  %v736_v31 = vadd.f32 %v3421_v57, %v3755_v52  ;;  %v3781_v40 = vpop.f32.mrf.mxu0  ;;  %2723 = vtanh.f32 %v527_v36  ;;  %v739_v57 = vadd.f32 %v3439_v10, %v3755_v52 }
 0x18d   : > { %2725 = vtanh.f32 %v736_v31 }
 0x18e   : > { %v3769_v11 = vpop.f32.mrf.mxu2  ;;  %v3771_v6 = vpop.f32.mrf.mxu3 }
 0x18f   : > { %4507 = vst [vmem:[#allocation64_spill] sm:$0xff] %v3769_v11  ;;  %v3783_v11 = vpop.f32.mrf.mxu1 }
 0x190   : > { %4508 = vst [vmem:[#allocation65_spill] sm:$0xff] %v3771_v6  ;;  %v2722_v6 = vpop.eup %2721 }
 0x191   : > { %v2724_v38 = vpop.eup %2723 }
 0x193   : > { %2523 = vmatmul.msk.f32.gmra.mxu2 %vm306_vm1, %v3404_v45  ;;  %2588 = vmatmul.msk.f32.gmra.mxu3 %vm306_vm1, %v3404_v45  ;;  %v530_v45 = vadd.f32 %v3437_v7, %v3753_v53  ;;  %v2726_v36 = vpop.eup %2725 }
 0x195   : > { %2727 = vtanh.f32 %v530_v45 }
 0x196   : > { %v955_v47 = vpop.f32.mrf.mxu2  ;;  %v1164_v21 = vpop.f32.mrf.mxu3  ;;  %2729 = vtanh.f32 %v739_v57 }
 0x197   : > { %v1484_v56 = vmul.f32 %v2720_v43, %v955_v47  ;;  %v1485_v39 = vmul.f32 %v2722_v6, %v1164_v21  ;;  %v3796_v21 = vpop.f32.mrf.mxu1 }
 0x199   : > { %1844 = vmatmul.f32.vlgmr.msrb.gmra.mxu0 %v1484_v56  ;;  %2637 = vmatmul.msk.f32.vlgmr.msrb.gmra.mxu1 %vm1631_vm3, %v1485_v39  ;;  %v3794_v39 = vpop.f32.mrf.mxu0 }
 0x19b   : > { %2524 = vmatmul.msk.f32.gmra.mxu2 %vm306_vm1, %v3425_v62  ;;  %2589 = vmatmul.msk.f32.gmra.mxu3 %vm306_vm1, %v3425_v62  ;;  %v533_v62 = vadd.f32 %v3458_v26, %v3753_v53  ;;  %v2728_v7 = vpop.eup %2727 }
 0x19c   : > { %v2730_v10 = vpop.eup %2729 }
 0x19d   : > { %2731 = vtanh.f32 %v533_v62 }
 0x19e   : > { %v958_v43 = vpop.f32.mrf.mxu2  ;;  %v1167_v6 = vpop.f32.mrf.mxu3 }
 0x19f   : > { %v1486_v31 = vmul.f32 %v2724_v38, %v958_v43  ;;  %v1487_v47 = vmul.f32 %v2726_v36, %v1167_v6  ;;  %v742_v38 = vadd.f32 %v3460_v30, %v3755_v52  ;;  %v3810_v43 = vpop.f32.mrf.mxu1  ;;  %v745_v30 = vadd.f32 %v3479_v17, %v3755_v52 }
 0x1a1   : > { %1847 = vmatmul.f32.gmra.mxu0 %v1486_v31  ;;  %2638 = vmatmul.msk.f32.gmra.mxu1 %vm1631_vm3, %v1487_v47  ;;  %2733 = vtanh.f32 %v742_v38  ;;  %v3808_v26 = vpop.f32.mrf.mxu0 }
 0x1a3   : > { %2525 = vmatmul.msk.f32.gmra.mxu2 %vm306_vm1, %v3443_v15  ;;  %2590 = vmatmul.msk.f32.gmra.mxu3 %vm306_vm1, %v3443_v15  ;;  %v536_v15 = vadd.f32 %v3477_v12, %v3753_v53  ;;  %v2732_v6 = vpop.eup %2731  ;;  %v539_v12 = vadd.f32 %v3499_v20, %v3753_v53 }
 0x1a5   : > { %2735 = vtanh.f32 %v536_v15 }
 0x1a6   : > { %v961_v56 = vpop.f32.mrf.mxu2  ;;  %v1170_v45 = vpop.f32.mrf.mxu3  ;;  %2737 = vtanh.f32 %v745_v30 }
 0x1a7   : > { %v1488_v57 = vmul.f32 %v2728_v7, %v961_v56  ;;  %v1489_v36 = vmul.f32 %v2730_v10, %v1170_v45  ;;  %v2734_v31 = vpop.eup %2733  ;;  %v3829_v17 = vpop.f32.mrf.mxu1  ;;  %v748_v10 = vadd.f32 %v3501_v5, %v3755_v52  ;;  %2739 = vtanh.f32 %v539_v12 }
 0x1a8   : > { %v751_v5 = vadd.f32 %v3523_v54, %v3755_v52  ;;  %v754_v54 = vadd.f32 %v3545_v35, %v3755_v52  ;;  %v757_v35 = vadd.f32 %v3564_v32, %v3755_v52  ;;  %v760_v32 = vadd.f32 %v3586_v23, %v3755_v52 }
 0x1a9   : > { %1850 = vmatmul.f32.gmra.mxu0 %v1488_v57  ;;  %2639 = vmatmul.msk.f32.gmra.mxu1 %vm1631_vm3, %v1489_v36  ;;  %2741 = vtanh.f32 %v748_v10 }
 0x1ab   : > { %2526 = vmatmul.msk.f32.gmra.mxu2 %vm306_vm1, %v3463_v42  ;;  %2591 = vmatmul.msk.f32.gmra.mxu3 %vm306_vm1, %v3463_v42  ;;  %v3827_v42 = vpop.f32.mrf.mxu0  ;;  %v2736_v56 = vpop.eup %2735 }
 0x1ac   : > { %v2738_v45 = vpop.eup %2737 }
 0x1ad   : > { %v2740_v30 = vpop.eup %2739 }
 0x1ae   : > { %v964_v47 = vpop.f32.mrf.mxu2  ;;  %v1173_v62 = vpop.f32.mrf.mxu3 }
 0x1af   : > { %v1490_v38 = vmul.f32 %v2732_v6, %v964_v47  ;;  %v1491_v7 = vmul.f32 %v2734_v31, %v1173_v62  ;;  %v3844_v31 = vpop.f32.mrf.mxu1  ;;  %v2742_v47 = vpop.eup %2741 }
 0x1b1   : > { %1853 = vmatmul.f32.gmra.mxu0 %v1490_v38  ;;  %2640 = vmatmul.msk.f32.gmra.mxu1 %vm1631_vm3, %v1491_v7 }
 0x1b3   : > { %2527 = vmatmul.msk.f32.gmra.mxu2 %vm306_vm1, %v3482_v24  ;;  %2592 = vmatmul.msk.f32.gmra.mxu3 %vm306_vm1, %v3482_v24  ;;  %v542_v24 = vadd.f32 %v3521_v60, %v3753_v53  ;;  %v3842_v6 = vpop.f32.mrf.mxu0 }
 0x1b5   : > { %2743 = vtanh.f32 %v542_v24 }
 0x1b6   : > { %v967_v57 = vpop.f32.mrf.mxu2  ;;  %v1176_v36 = vpop.f32.mrf.mxu3  ;;  %2745 = vtanh.f32 %v751_v5 }
 0x1b7   : > { %v1492_v15 = vmul.f32 %v2736_v56, %v967_v57  ;;  %v1493_v20 = vmul.f32 %v2738_v45, %v1176_v36 }
 0x1b9   : > { %1856 = vmatmul.f32.gmra.mxu0 %v1492_v15  ;;  %2641 = vmatmul.msk.f32.gmra.mxu1 %vm1631_vm3, %v1493_v20  ;;  %v3857_v20 = vpop.f32.mrf.mxu1 }
 0x1bb   : > { %2528 = vmatmul.msk.f32.gmra.mxu2 %vm306_vm1, %v3504_v1  ;;  %2593 = vmatmul.msk.f32.gmra.mxu3 %vm306_vm1, %v3504_v1  ;;  %v545_v1 = vadd.f32 %v3543_v28, %v3753_v53  ;;  %v2744_v12 = vpop.eup %2743  ;;  %v3855_v15 = vpop.f32.mrf.mxu0 }
 0x1bc   : > { %v2746_v10 = vpop.eup %2745 }
 0x1bd   : > { %2747 = vtanh.f32 %v545_v1 }
 0x1be   : > { %v970_v62 = vpop.f32.mrf.mxu2  ;;  %v1179_v38 = vpop.f32.mrf.mxu3  ;;  %2749 = vtanh.f32 %v754_v54 }
 0x1bf   : > { %v1494_v7 = vmul.f32 %v2740_v30, %v970_v62  ;;  %v1495_v60 = vmul.f32 %v2742_v47, %v1179_v38 }
 0x1c1   : > { %1859 = vmatmul.f32.gmra.mxu0 %v1494_v7  ;;  %2642 = vmatmul.msk.f32.gmra.mxu1 %vm1631_vm3, %v1495_v60  ;;  %v3871_v38 = vpop.f32.mrf.mxu1 }
 0x1c3   : > { %2529 = vmatmul.msk.f32.gmra.mxu2 %vm306_vm1, %v3526_v51  ;;  %2594 = vmatmul.msk.f32.gmra.mxu3 %vm306_vm1, %v3526_v51  ;;  %v548_v51 = vadd.f32 %v3562_v49, %v3753_v53  ;;  %v2748_v28 = vpop.eup %2747  ;;  %v3869_v49 = vpop.f32.mrf.mxu0 }
 0x1c4   : > { %v2750_v24 = vpop.eup %2749 }
 0x1c5   : > { %2751 = vtanh.f32 %v548_v51 }
 0x1c6   : > { %v973_v56 = vpop.f32.mrf.mxu2  ;;  %v1182_v45 = vpop.f32.mrf.mxu3  ;;  %2753 = vtanh.f32 %v757_v35 }
 0x1c7   : > { %v1496_v57 = vmul.f32 %v2744_v12, %v973_v56  ;;  %v1497_v36 = vmul.f32 %v2746_v10, %v1182_v45  ;;  %v763_v56 = vadd.f32 %v3605_v34, %v3755_v52  ;;  %v766_v34 = vadd.f32 %v3627_v14, %v3755_v52 }
 0x1c8   : > { %v769_v14 = vadd.f32 %v3646_v41, %v3755_v52 }
 0x1c9   : > { %1862 = vmatmul.f32.gmra.mxu0 %v1496_v57  ;;  %2643 = vmatmul.msk.f32.gmra.mxu1 %vm1631_vm3, %v1497_v36 }
 0x1cb   : > { %2530 = vmatmul.msk.f32.gmra.mxu2 %vm306_vm1, %v3548_v33  ;;  %2595 = vmatmul.msk.f32.gmra.mxu3 %vm306_vm1, %v3548_v33  ;;  %v551_v33 = vadd.f32 %v3584_v27, %v3753_v53  ;;  %v2752_v7 = vpop.eup %2751  ;;  %v554_v27 = vadd.f32 %v3603_v37, %v3753_v53  ;;  %v3888_v23 = vpop.f32.mrf.mxu0 }
 0x1cc   : > { %v2754_v60 = vpop.eup %2753 }
 0x1cd   : > { %2755 = vtanh.f32 %v551_v33 }
 0x1ce   : > { %v976_v5 = vpop.f32.mrf.mxu2  ;;  %v1185_v30 = vpop.f32.mrf.mxu3  ;;  %2757 = vtanh.f32 %v760_v32 }
 0x1cf   : > { %v1498_v47 = vmul.f32 %v2748_v28, %v976_v5  ;;  %v1499_v62 = vmul.f32 %v2750_v24, %v1185_v30  ;;  %2759 = vtanh.f32 %v554_v27 }
 0x1d0   : > { %2761 = vtanh.f32 %v763_v56 }
 0x1d1   : > { %1865 = vmatmul.f32.gmra.mxu0 %v1498_v47  ;;  %2644 = vmatmul.msk.f32.gmra.mxu1 %vm1631_vm3, %v1499_v62 }
 0x1d3   : > { %2531 = vmatmul.msk.f32.gmra.mxu2 %vm306_vm1, %v3567_v29  ;;  %2596 = vmatmul.msk.f32.gmra.mxu3 %vm306_vm1, %v3567_v29  ;;  %v3890_v29 = vpop.f32.mrf.mxu1  ;;  %v2756_v45 = vpop.eup %2755 }
 0x1d4   : > { %v2758_v57 = vpop.eup %2757  ;;  %v3903_v24 = vpop.f32.mrf.mxu0 }
 0x1d5   : > { %v2760_v28 = vpop.eup %2759 }
 0x1d6   : > { %v979_v1 = vpop.f32.mrf.mxu2  ;;  %v1188_v54 = vpop.f32.mrf.mxu3 }
 0x1d7   : > { %v1500_v12 = vmul.f32 %v2752_v7, %v979_v1  ;;  %v1501_v10 = vmul.f32 %v2754_v60, %v1188_v54  ;;  %v2762_v30 = vpop.eup %2761 }
 0x1d9   : > { %1868 = vmatmul.f32.gmra.mxu0 %v1500_v12  ;;  %2645 = vmatmul.msk.f32.gmra.mxu1 %vm1631_vm3, %v1501_v10 }
 0x1db   : > { %2532 = vmatmul.msk.f32.gmra.mxu2 %vm306_vm1, %v3589_v22  ;;  %2597 = vmatmul.msk.f32.gmra.mxu3 %vm306_vm1, %v3589_v22  ;;  %v557_v22 = vadd.f32 %v3625_v18, %v3753_v53  ;;  %v3905_v5 = vpop.f32.mrf.mxu1 }
 0x1dc   : > { %v3916_v10 = vpop.f32.mrf.mxu0 }
 0x1dd   : > { %2763 = vtanh.f32 %v557_v22 }
 0x1de   : > { %v982_v36 = vpop.f32.mrf.mxu2  ;;  %v1191_v51 = vpop.f32.mrf.mxu3  ;;  %2765 = vtanh.f32 %v766_v34 }
 0x1df   : > { %v1502_v35 = vmul.f32 %v2756_v45, %v982_v36  ;;  %v1503_v37 = vmul.f32 %v2758_v57, %v1191_v51 }
 0x1e1   : > { %1871 = vmatmul.f32.gmra.mxu0 %v1502_v35  ;;  %2646 = vmatmul.msk.f32.gmra.mxu1 %vm1631_vm3, %v1503_v37 }
 0x1e3   : > { %2533 = vmatmul.msk.f32.gmra.mxu2 %vm306_vm1, %v3608_v19  ;;  %2598 = vmatmul.msk.f32.gmra.mxu3 %vm306_vm1, %v3608_v19  ;;  %v560_v19 = vadd.f32 %v3644_v46, %v3753_v53  ;;  %v2764_v32 = vpop.eup %2763  ;;  %v3918_v27 = vpop.f32.mrf.mxu1  ;;  %v772_v46 = vadd.f32 %v3668_v4, %v3755_v52  ;;  %v775_v4 = vadd.f32 %v3687_v50, %v3755_v52 }
 0x1e4   : > { %v2766_v7 = vpop.eup %2765 }
 0x1e5   : > { %2767 = vtanh.f32 %v560_v19 }
 0x1e6   : > { %v985_v47 = vpop.f32.mrf.mxu2  ;;  %v1194_v62 = vpop.f32.mrf.mxu3  ;;  %2769 = vtanh.f32 %v769_v14 }
 0x1e7   : > { %v1504_v33 = vmul.f32 %v2760_v28, %v985_v47  ;;  %v1505_v18 = vmul.f32 %v2762_v30, %v1194_v62  ;;  %v778_v62 = vadd.f32 %v3709_v59, %v3755_v52  ;;  %v781_v59 = vadd.f32 %v3728_v61, %v3755_v52  ;;  %v2975_v61 = vld [vmem:[%s3095_s20 + $0x100] sm:$0xff] }
 0x1e9   : > { %1874 = vmatmul.f32.gmra.mxu0 %v1504_v33  ;;  %2647 = vmatmul.msk.f32.gmra.mxu1 %vm1631_vm3, %v1505_v18 }
 0x1eb   : > { %2534 = vmatmul.msk.f32.gmra.mxu2 %vm306_vm1, %v3630_v13  ;;  %2599 = vmatmul.msk.f32.gmra.mxu3 %vm306_vm1, %v3630_v13  ;;  %v563_v13 = vadd.f32 %v3666_v8, %v3753_v53  ;;  %v2768_v41 = vpop.eup %2767  ;;  %v3930_v8 = vpop.f32.mrf.mxu0 }
 0x1ec   : > { %v2770_v56 = vpop.eup %2769  ;;  %v3932_v35 = vpop.f32.mrf.mxu1 }
 0x1ed   : > { %2771 = vtanh.f32 %v563_v13 }
 0x1ee   : > { %v988_v60 = vpop.f32.mrf.mxu2  ;;  %v1197_v1 = vpop.f32.mrf.mxu3  ;;  %2773 = vtanh.f32 %v772_v46 }
 0x1ef   : > { %v1506_v54 = vmul.f32 %v2764_v32, %v988_v60  ;;  %v1507_v12 = vmul.f32 %v2766_v7, %v1197_v1 }
 0x1f1   : > { %1877 = vmatmul.f32.gmra.mxu0 %v1506_v54  ;;  %2648 = vmatmul.msk.f32.gmra.mxu1 %vm1631_vm3, %v1507_v12 }
 0x1f3   : > { %2535 = vmatmul.msk.f32.gmra.mxu2 %vm306_vm1, %v3649_v9  ;;  %2600 = vmatmul.msk.f32.gmra.mxu3 %vm306_vm1, %v3649_v9  ;;  %v566_v9 = vadd.f32 %v3685_v55, %v3753_v53  ;;  %v2772_v37 = vpop.eup %2771  ;;  %v569_v55 = vadd.f32 %v3707_v63, %v3753_v53 }
 0x1f4   : > { %v2774_v22 = vpop.eup %2773  ;;  %v3951_v50 = vpop.f32.mrf.mxu1 }
 0x1f5   : > { %2775 = vtanh.f32 %v566_v9 }
 0x1f6   : > { %v991_v45 = vpop.f32.mrf.mxu2  ;;  %v1200_v57 = vpop.f32.mrf.mxu3  ;;  %2777 = vtanh.f32 %v775_v4 }
 0x1f7   : > { %v1508_v36 = vmul.f32 %v2768_v41, %v991_v45  ;;  %v1509_v51 = vmul.f32 %v2770_v56, %v1200_v57  ;;  %2779 = vtanh.f32 %v569_v55  ;;  %v784_v41 = vadd.f32 %v3740_v16, %v3755_v52 }
 0x1f8   : > { %2781 = vtanh.f32 %v778_v62 }
 0x1f9   : > { %1880 = vmatmul.f32.gmra.mxu0 %v1508_v36  ;;  %2649 = vmatmul.msk.f32.gmra.mxu1 %vm1631_vm3, %v1509_v51 }
 0x1fb   : > { %2536 = vmatmul.msk.f32.gmra.mxu2 %vm306_vm1, %v3671_v3  ;;  %2601 = vmatmul.msk.f32.gmra.mxu3 %vm306_vm1, %v3671_v3  ;;  %v3949_v3 = vpop.f32.mrf.mxu0  ;;  %v2776_v33 = vpop.eup %2775 }
 0x1fc   : > { %v2778_v18 = vpop.eup %2777  ;;  %v3966_v1 = vpop.f32.mrf.mxu1 }
 0x1fd   : > { %v2780_v7 = vpop.eup %2779 }
 0x1fe   : > { %v994_v34 = vpop.f32.mrf.mxu2  ;;  %v1203_v28 = vpop.f32.mrf.mxu3 }
 0x1ff   : > { %v1510_v30 = vmul.f32 %v2772_v37, %v994_v34  ;;  %v1511_v47 = vmul.f32 %v2774_v22, %v1203_v28  ;;  %v2782_v54 = vpop.eup %2781  ;;  %v578_v37 = vadd.f32 %v3763_v25, %v3753_v53  ;;  %v2976_v22 = vld [vmem:[%s3095_s20 + $0x108] sm:$0xff]  ;;  %v787_v34 = vadd.f32 %v3765_v44, %v3755_v52 }
 0x200   : > { %v581_v44 = vadd.f32 %v3781_v40, %v3753_v53 }
 0x201   : > { %1883 = vmatmul.f32.gmra.mxu0 %v1510_v30  ;;  %2650 = vmatmul.msk.f32.gmra.mxu1 %vm1631_vm3, %v1511_v47 }
 0x203   : > { %2537 = vmatmul.msk.f32.gmra.mxu2 %vm306_vm1, %v3690_v0  ;;  %2602 = vmatmul.msk.f32.gmra.mxu3 %vm306_vm1, %v3690_v0  ;;  %v572_v0 = vadd.f32 %v3726_v2, %v3753_v53  ;;  %v3964_v60 = vpop.f32.mrf.mxu0 }
 0x205   : > { %2783 = vtanh.f32 %v572_v0 }
 0x206   : > { %v997_v19 = vpop.f32.mrf.mxu2  ;;  %v1206_v14 = vpop.f32.mrf.mxu3  ;;  %2785 = vtanh.f32 %v781_v59 }
 0x207   : > { %v1512_v32 = vmul.f32 %v2776_v33, %v997_v19  ;;  %v1513_v63 = vmul.f32 %v2778_v18, %v1206_v14  ;;  %v2977_v14 = vld [vmem:[%s3095_s20 + $0x110] sm:$0xff] }
 0x209   : > { %1886 = vmatmul.f32.gmra.mxu0 %v1512_v32  ;;  %2651 = vmatmul.msk.f32.gmra.mxu1 %vm1631_vm3, %v1513_v63  ;;  %v790_v32 = vadd.f32 %v3783_v11, %v3755_v52  ;;  %v584_v11 = vadd.f32 %v3794_v39, %v3753_v53 }
 0x20b   : > { %2538 = vmatmul.msk.f32.gmra.mxu2 %vm306_vm1, %v3712_v58  ;;  %2603 = vmatmul.msk.f32.gmra.mxu3 %vm306_vm1, %v3712_v58  ;;  %v575_v58 = vadd.f32 %v3738_v48, %v3753_v53  ;;  %v2784_v56 = vpop.eup %2783 }
 0x20c   : > { %v2786_v45 = vpop.eup %2785 }
 0x20d   : > { %2787 = vtanh.f32 %v575_v58  ;;  %v793_v58 = vadd.f32 %v3796_v21, %v3755_v52  ;;  %v587_v21 = vadd.f32 %v3808_v26, %v3753_v53 }
 0x20e   : > { %v1000_v12 = vpop.f32.mrf.mxu2  ;;  %v1209_v13 = vpop.f32.mrf.mxu3  ;;  %2789 = vtanh.f32 %v784_v41 }
 0x20f   : > { %v1514_v2 = vmul.f32 %v2780_v7, %v1000_v12  ;;  %v1515_v46 = vmul.f32 %v2782_v54, %v1209_v13  ;;  %2791 = vtanh.f32 %v578_v37 }
 0x210   : > { %2793 = vtanh.f32 %v787_v34 }
 0x211   : > { %1889 = vmatmul.f32.gmra.mxu0 %v1514_v2  ;;  %2652 = vmatmul.msk.f32.gmra.mxu1 %vm1631_vm3, %v1515_v46  ;;  %2795 = vtanh.f32 %v581_v44  ;;  %v2978_v46 = vld [vmem:[%s3095_s20 + $0x118] sm:$0xff] }
 0x212   : > { %2797 = vtanh.f32 %v790_v32 }
 0x213   : > { %2539 = vmatmul.msk.f32.gmra.mxu2 %vm306_vm1, %v2975_v61  ;;  %2604 = vmatmul.msk.f32.gmra.mxu3 %vm306_vm1, %v2975_v61  ;;  %v2788_v28 = vpop.eup %2787  ;;  %2799 = vtanh.f32 %v584_v11 }
 0x214   : > { %v2790_v30 = vpop.eup %2789  ;;  %2801 = vtanh.f32 %v793_v58 }
 0x215   : > { %v2792_v63 = vpop.eup %2791  ;;  %2803 = vtanh.f32 %v587_v21 }
 0x216   : > { %v1003_v57 = vpop.f32.mrf.mxu2  ;;  %v1212_v36 = vpop.f32.mrf.mxu3 }
 0x217   : > { %v1516_v51 = vmul.f32 %v2784_v56, %v1003_v57  ;;  %v1517_v9 = vmul.f32 %v2786_v45, %v1212_v36  ;;  %v1845_v4 = vpop.f32.mrf.mxu0  ;;  %v2054_v48 = vpop.f32.mrf.mxu1 }
 0x218   : > { %v2055_v16 = vadd.f32 %v2054_v48, %v1845_v4  ;;  %v2794_v0 = vpop.eup %2793  ;;  %v2979_v4 = vld [vmem:[%s3095_s20 + $0x120] sm:$0xff]  ;;  %v796_v48 = vadd.f32 %v3810_v43, %v3755_v52  ;;  %v590_v43 = vadd.f32 %v3827_v42, %v3753_v53 }
 0x219   : > { %1892 = vmatmul.f32.gmra.mxu0 %v1516_v51  ;;  %2653 = vmatmul.msk.f32.gmra.mxu1 %vm1631_vm3, %v1517_v9  ;;  %v2796_v61 = vpop.eup %2795 }
 0x21a   : > { %2247 = vst.msk [vmem:[%s3981_s9] sm:$0xff] %vm2246_vm4, %v2055_v16  ;;  %v2798_v41 = vpop.eup %2797  ;;  %2805 = vtanh.f32 %v796_v48  ;;  %v808_v48 = vadd.f32 %v3871_v38, %v3755_v52  ;;  %v602_v38 = vadd.f32 %v3888_v23, %v3753_v53 }
 0x21b   : > { %2540 = vmatmul.msk.f32.gmra.mxu2 %vm306_vm1, %v2976_v22  ;;  %2605 = vmatmul.msk.f32.gmra.mxu3 %vm306_vm1, %v2976_v22  ;;  %v2800_v16 = vpop.eup %2799  ;;  %2807 = vtanh.f32 %v590_v43  ;;  %v811_v43 = vadd.f32 %v3890_v29, %v3755_v52  ;;  %v605_v29 = vadd.f32 %v3903_v24, %v3753_v53 }
 0x21c   : > { %v2802_v37 = vpop.eup %2801 }
 0x21e   : > { %v1006_v47 = vpop.f32.mrf.mxu2  ;;  %v1215_v55 = vpop.f32.mrf.mxu3 }
 0x21f   : > { %v1518_v62 = vmul.f32 %v2788_v28, %v1006_v47  ;;  %v1519_v33 = vmul.f32 %v2790_v30, %v1215_v55  ;;  %v1848_v18 = vpop.f32.mrf.mxu0  ;;  %v2057_v19 = vpop.f32.mrf.mxu1 }
 0x220   : > { %v2058_v25 = vadd.f32 %v2057_v19, %v1848_v18  ;;  %v2804_v18 = vpop.eup %2803 }
 0x221   : > { %1895 = vmatmul.f32.gmra.mxu0 %v1518_v62  ;;  %2654 = vmatmul.msk.f32.gmra.mxu1 %vm1631_vm3, %v1519_v33  ;;  %v2980_v62 = vld [vmem:[%s3095_s20 + $0x128] sm:$0xff]  ;;  %v799_v33 = vadd.f32 %v3829_v17, %v3755_v52  ;;  %v2806_v19 = vpop.eup %2805  ;;  %v593_v17 = vadd.f32 %v3842_v6, %v3753_v53 }
 0x222   : > { %2248 = vst.msk [vmem:[%s3981_s9 + $0x8] sm:$0xff] %vm2246_vm4, %v2058_v25 }
 0x223   : > { %2541 = vmatmul.msk.f32.gmra.mxu2 %vm306_vm1, %v2977_v14  ;;  %2606 = vmatmul.msk.f32.gmra.mxu3 %vm306_vm1, %v2977_v14  ;;  %2809 = vtanh.f32 %v799_v33 }
 0x224   : > { %2811 = vtanh.f32 %v593_v17 }
 0x226   : > { %v1009_v59 = vpop.f32.mrf.mxu2  ;;  %v1218_v7 = vpop.f32.mrf.mxu3 }
 0x227   : > { %v1520_v54 = vmul.f32 %v2792_v63, %v1009_v59  ;;  %v1521_v12 = vmul.f32 %v2794_v0, %v1218_v7  ;;  %v1851_v13 = vpop.f32.mrf.mxu0  ;;  %v2060_v2 = vpop.f32.mrf.mxu1  ;;  %v2981_v59 = vld [vmem:[%s3095_s20 + $0x130] sm:$0xff]  ;;  %v802_v7 = vadd.f32 %v3844_v31, %v3755_v52  ;;  %v596_v31 = vadd.f32 %v3855_v15, %v3753_v53 }
 0x228   : > { %v2061_v40 = vadd.f32 %v2060_v2, %v1851_v13 }
 0x229   : > { %1898 = vmatmul.f32.gmra.mxu0 %v1520_v54  ;;  %2655 = vmatmul.msk.f32.gmra.mxu1 %vm1631_vm3, %v1521_v12  ;;  %v2808_v54 = vpop.eup %2807  ;;  %2813 = vtanh.f32 %v802_v7 }
 0x22a   : > { %2249 = vst.msk [vmem:[%s3981_s9 + $0x10] sm:$0xff] %vm2246_vm4, %v2061_v40  ;;  %v2810_v12 = vpop.eup %2809  ;;  %2815 = vtanh.f32 %v596_v31 }
 0x22b   : > { %2542 = vmatmul.msk.f32.gmra.mxu2 %vm306_vm1, %v2978_v46  ;;  %2607 = vmatmul.msk.f32.gmra.mxu3 %vm306_vm1, %v2978_v46 }
 0x22e   : > { %v1012_v56 = vpop.f32.mrf.mxu2  ;;  %v1221_v45 = vpop.f32.mrf.mxu3 }
 0x22f   : > { %v1522_v57 = vmul.f32 %v2796_v61, %v1012_v56  ;;  %v1523_v36 = vmul.f32 %v2798_v41, %v1221_v45  ;;  %v1854_v51 = vpop.f32.mrf.mxu0  ;;  %v2063_v9 = vpop.f32.mrf.mxu1  ;;  %v2982_v61 = vld [vmem:[%s3095_s20 + $0x138] sm:$0xff]  ;;  %v805_v41 = vadd.f32 %v3857_v20, %v3755_v52  ;;  %v599_v20 = vadd.f32 %v3869_v49, %v3753_v53 }
 0x230   : > { %v2064_v39 = vadd.f32 %v2063_v9, %v1854_v51  ;;  %v2812_v56 = vpop.eup %2811 }
 0x231   : > { %1901 = vmatmul.f32.gmra.mxu0 %v1522_v57  ;;  %2656 = vmatmul.msk.f32.gmra.mxu1 %vm1631_vm3, %v1523_v36  ;;  %v2814_v45 = vpop.eup %2813  ;;  %2817 = vtanh.f32 %v805_v41 }
 0x232   : > { %2250 = vst.msk [vmem:[%s3981_s9 + $0x18] sm:$0xff] %vm2246_vm4, %v2064_v39  ;;  %2819 = vtanh.f32 %v599_v20 }
 0x233   : > { %2543 = vmatmul.msk.f32.gmra.mxu2 %vm306_vm1, %v2979_v4  ;;  %2608 = vmatmul.msk.f32.gmra.mxu3 %vm306_vm1, %v2979_v4  ;;  %v2983_v4 = vld [vmem:[%s3095_s20 + $0x140] sm:$0xff]  ;;  %2821 = vtanh.f32 %v808_v48 }
 0x234   : > { %2823 = vtanh.f32 %v602_v38 }
 0x235   : > { %2825 = vtanh.f32 %v811_v43  ;;  %v826_v43 = vadd.f32 %v3966_v1, %v3755_v52 }
 0x236   : > { %v1015_v22 = vpop.f32.mrf.mxu2  ;;  %v1224_v34 = vpop.f32.mrf.mxu3  ;;  %2827 = vtanh.f32 %v605_v29  ;;  %v2990_v29 = vld [vmem:[%s3095_s20 + $0x178] sm:$0xff] }
 0x237   : > { %v1524_v28 = vmul.f32 %v2800_v16, %v1015_v22  ;;  %v1525_v30 = vmul.f32 %v2802_v37, %v1224_v34  ;;  %v1857_v47 = vpop.f32.mrf.mxu0  ;;  %v2066_v55 = vpop.f32.mrf.mxu1 }
 0x238   : > { %v2067_v26 = vadd.f32 %v2066_v55, %v1857_v47  ;;  %v2816_v16 = vpop.eup %2815 }
 0x239   : > { %1904 = vmatmul.f32.gmra.mxu0 %v1524_v28  ;;  %2657 = vmatmul.msk.f32.gmra.mxu1 %vm1631_vm3, %v1525_v30  ;;  %v2818_v37 = vpop.eup %2817 }
 0x23a   : > { %2251 = vst.msk [vmem:[%s3981_s9 + $0x20] sm:$0xff] %vm2246_vm4, %v2067_v26  ;;  %v2984_v26 = vld [vmem:[%s3095_s20 + $0x148] sm:$0xff] }
 0x23b   : > { %2544 = vmatmul.msk.f32.gmra.mxu2 %vm306_vm1, %v2980_v62  ;;  %2609 = vmatmul.msk.f32.gmra.mxu3 %vm306_vm1, %v2980_v62  ;;  %v2820_v62 = vpop.eup %2819 }
 0x23c   : > { %v2822_v33 = vpop.eup %2821 }
 0x23e   : > { %v1018_v25 = vpop.f32.mrf.mxu2  ;;  %v1227_v44 = vpop.f32.mrf.mxu3 }
 0x23f   : > { %v1526_v14 = vmul.f32 %v2804_v18, %v1018_v25  ;;  %v1527_v32 = vmul.f32 %v2806_v19, %v1227_v44  ;;  %v1860_v63 = vpop.f32.mrf.mxu0  ;;  %v2069_v0 = vpop.f32.mrf.mxu1 }
 0x240   : > { %v2070_v42 = vadd.f32 %v2069_v0, %v1860_v63  ;;  %v2985_v63 = vld [vmem:[%s3095_s20 + $0x150] sm:$0xff]  ;;  %v814_v0 = vadd.f32 %v3905_v5, %v3755_v52  ;;  %v608_v5 = vadd.f32 %v3916_v10, %v3753_v53 }
 0x241   : > { %1907 = vmatmul.f32.gmra.mxu0 %v1526_v14  ;;  %2658 = vmatmul.msk.f32.gmra.mxu1 %vm1631_vm3, %v1527_v32 }
 0x242   : > { %2252 = vst.msk [vmem:[%s3981_s9 + $0x28] sm:$0xff] %vm2246_vm4, %v2070_v42  ;;  %v2824_v42 = vpop.eup %2823  ;;  %2829 = vtanh.f32 %v814_v0 }
 0x243   : > { %2545 = vmatmul.msk.f32.gmra.mxu2 %vm306_vm1, %v2981_v59  ;;  %2610 = vmatmul.msk.f32.gmra.mxu3 %vm306_vm1, %v2981_v59  ;;  %v2826_v17 = vpop.eup %2825  ;;  %2831 = vtanh.f32 %v608_v5  ;;  %v4511_v5 = vld [vmem:[#allocation4_spill] sm:$0xff] }
 0x246   : > { %v1021_v13 = vpop.f32.mrf.mxu2  ;;  %v1230_v2 = vpop.f32.mrf.mxu3 }
 0x247   : > { %v1528_v40 = vmul.f32 %v2808_v54, %v1021_v13  ;;  %v1529_v11 = vmul.f32 %v2810_v12, %v1230_v2  ;;  %v1863_v46 = vpop.f32.mrf.mxu0  ;;  %v2072_v58 = vpop.f32.mrf.mxu1 }
 0x248   : > { %v2073_v6 = vadd.f32 %v2072_v58, %v1863_v46  ;;  %v2828_v46 = vpop.eup %2827 }
 0x249   : > { %1910 = vmatmul.f32.gmra.mxu0 %v1528_v40  ;;  %2659 = vmatmul.msk.f32.gmra.mxu1 %vm1631_vm3, %v1529_v11  ;;  %v2986_v40 = vld [vmem:[%s3095_s20 + $0x158] sm:$0xff]  ;;  %v817_v11 = vadd.f32 %v3918_v27, %v3755_v52  ;;  %v2830_v58 = vpop.eup %2829  ;;  %v611_v27 = vadd.f32 %v3930_v8, %v3753_v53 }
 0x24a   : > { %2253 = vst.msk [vmem:[%s3981_s9 + $0x30] sm:$0xff] %vm2246_vm4, %v2073_v6 }
 0x24b   : > { %2546 = vmatmul.msk.f32.gmra.mxu2 %vm306_vm1, %v2982_v61  ;;  %2611 = vmatmul.msk.f32.gmra.mxu3 %vm306_vm1, %v2982_v61  ;;  %2833 = vtanh.f32 %v817_v11  ;;  %v2991_v11 = vld [vmem:[%s3095_s20 + $0x180] sm:$0xff] }
 0x24c   : > { %2835 = vtanh.f32 %v611_v27 }
 0x24e   : > { %v1024_v57 = vpop.f32.mrf.mxu2  ;;  %v1233_v36 = vpop.f32.mrf.mxu3 }
 0x24f   : > { %v1530_v51 = vmul.f32 %v2812_v56, %v1024_v57  ;;  %v1531_v9 = vmul.f32 %v2814_v45, %v1233_v36  ;;  %v1866_v39 = vpop.f32.mrf.mxu0  ;;  %v2075_v21 = vpop.f32.mrf.mxu1  ;;  %v2987_v57 = vld [vmem:[%s3095_s20 + $0x160] sm:$0xff]  ;;  %v820_v36 = vadd.f32 %v3932_v35, %v3755_v52  ;;  %v614_v35 = vadd.f32 %v3949_v3, %v3753_v53 }
 0x250   : > { %v2076_v15 = vadd.f32 %v2075_v21, %v1866_v39 }
 0x251   : > { %1913 = vmatmul.f32.gmra.mxu0 %v1530_v51  ;;  %2660 = vmatmul.msk.f32.gmra.mxu1 %vm1631_vm3, %v1531_v9  ;;  %v2832_v51 = vpop.eup %2831  ;;  %2837 = vtanh.f32 %v820_v36  ;;  %v4513_v36 = vld [vmem:[#allocation6_spill] sm:$0xff] }
 0x252   : > { %2254 = vst.msk [vmem:[%s3981_s9 + $0x38] sm:$0xff] %vm2246_vm4, %v2076_v15  ;;  %v2834_v9 = vpop.eup %2833  ;;  %2839 = vtanh.f32 %v614_v35 }
 0x253   : > { %2547 = vmatmul.msk.f32.gmra.mxu2 %vm306_vm1, %v2983_v4  ;;  %2612 = vmatmul.msk.f32.gmra.mxu3 %vm306_vm1, %v2983_v4 }
 0x256   : > { %v1027_v22 = vpop.f32.mrf.mxu2  ;;  %v1236_v34 = vpop.f32.mrf.mxu3 }
 0x257   : > { %v1532_v28 = vmul.f32 %v2816_v16, %v1027_v22  ;;  %v1533_v30 = vmul.f32 %v2818_v37, %v1236_v34  ;;  %v1869_v47 = vpop.f32.mrf.mxu0  ;;  %v2078_v55 = vpop.f32.mrf.mxu1  ;;  %v2988_v16 = vld [vmem:[%s3095_s20 + $0x168] sm:$0xff]  ;;  %v823_v37 = vadd.f32 %v3951_v50, %v3755_v52  ;;  %v617_v50 = vadd.f32 %v3964_v60, %v3753_v53 }
 0x258   : > { %v2079_v49 = vadd.f32 %v2078_v55, %v1869_v47  ;;  %v2836_v22 = vpop.eup %2835 }
 0x259   : > { %1916 = vmatmul.f32.gmra.mxu0 %v1532_v28  ;;  %2661 = vmatmul.msk.f32.gmra.mxu1 %vm1631_vm3, %v1533_v30  ;;  %v2838_v34 = vpop.eup %2837  ;;  %2841 = vtanh.f32 %v823_v37 }
 0x25a   : > { %2255 = vst.msk [vmem:[%s3981_s9 + $0x40] sm:$0xff] %vm2246_vm4, %v2079_v49  ;;  %2843 = vtanh.f32 %v617_v50 }
 0x25b   : > { %2548 = vmatmul.msk.f32.gmra.mxu2 %vm306_vm1, %v2984_v26  ;;  %2613 = vmatmul.msk.f32.gmra.mxu3 %vm306_vm1, %v2984_v26  ;;  %v2989_v26 = vld [vmem:[%s3095_s20 + $0x170] sm:$0xff]  ;;  %2845 = vtanh.f32 %v826_v43 }
 0x25e   : > { %v1030_v18 = vpop.f32.mrf.mxu2  ;;  %v1239_v19 = vpop.f32.mrf.mxu3 }
 0x25f   : > { %v1534_v25 = vmul.f32 %v2820_v62, %v1030_v18  ;;  %v1535_v44 = vmul.f32 %v2822_v33, %v1239_v19  ;;  %v1872_v14 = vpop.f32.mrf.mxu0  ;;  %v2081_v32 = vpop.f32.mrf.mxu1 }
 0x260   : > { %v2082_v23 = vadd.f32 %v2081_v32, %v1872_v14  ;;  %v2840_v62 = vpop.eup %2839 }
 0x261   : > { %1919 = vmatmul.f32.gmra.mxu0 %v1534_v25  ;;  %2662 = vmatmul.msk.f32.gmra.mxu1 %vm1631_vm3, %v1535_v44  ;;  %v2842_v33 = vpop.eup %2841 }
 0x262   : > { %2256 = vst.msk [vmem:[%s3981_s9 + $0x48] sm:$0xff] %vm2246_vm4, %v2082_v23  ;;  %v4509_v23 = vld [vmem:[#allocation2_spill] sm:$0xff] }
 0x263   : > { %2549 = vmatmul.msk.f32.gmra.mxu2 %vm306_vm1, %v2985_v63  ;;  %2614 = vmatmul.msk.f32.gmra.mxu3 %vm306_vm1, %v2985_v63  ;;  %v620_v1 = vadd.f32 %v4509_v23, %v3753_v53  ;;  %v4510_v63 = vld [vmem:[#allocation3_spill] sm:$0xff] }
 0x264   : > { %v829_v0 = vadd.f32 %v4510_v63, %v3755_v52 }
 0x265   : > { %2847 = vtanh.f32 %v620_v1 }
 0x266   : > { %v1033_v59 = vpop.f32.mrf.mxu2  ;;  %v1242_v7 = vpop.f32.mrf.mxu3  ;;  %2849 = vtanh.f32 %v829_v0 }
 0x267   : > { %v1536_v54 = vmul.f32 %v2824_v42, %v1033_v59  ;;  %v1537_v12 = vmul.f32 %v2826_v17, %v1242_v7  ;;  %v1875_v13 = vpop.f32.mrf.mxu0  ;;  %v2084_v2 = vpop.f32.mrf.mxu1 }
 0x268   : > { %v2085_v24 = vadd.f32 %v2084_v2, %v1875_v13  ;;  %v2844_v42 = vpop.eup %2843 }
 0x269   : > { %1922 = vmatmul.f32.gmra.mxu0 %v1536_v54  ;;  %2663 = vmatmul.msk.f32.gmra.mxu1 %vm1631_vm3, %v1537_v12  ;;  %v2846_v17 = vpop.eup %2845 }
 0x26a   : > { %2257 = vst.msk [vmem:[%s3981_s9 + $0x50] sm:$0xff] %vm2246_vm4, %v2085_v24 }
 0x26b   : > { %2550 = vmatmul.msk.f32.gmra.mxu2 %vm306_vm1, %v2986_v40  ;;  %2615 = vmatmul.msk.f32.gmra.mxu3 %vm306_vm1, %v2986_v40  ;;  %v623_v40 = vadd.f32 %v4511_v5, %v3753_v53 }
 0x26d   : > { %2851 = vtanh.f32 %v623_v40 }
 0x26e   : > { %v1036_v6 = vpop.f32.mrf.mxu2  ;;  %v1245_v31 = vpop.f32.mrf.mxu3 }
 0x26f   : > { %v1538_v61 = vmul.f32 %v2828_v46, %v1036_v6  ;;  %v1539_v41 = vmul.f32 %v2830_v58, %v1245_v31  ;;  %v1878_v56 = vpop.f32.mrf.mxu0  ;;  %v2087_v45 = vpop.f32.mrf.mxu1  ;;  %v4512_v46 = vld [vmem:[#allocation5_spill] sm:$0xff] }
 0x270   : > { %v2088_v10 = vadd.f32 %v2087_v45, %v1878_v56  ;;  %v832_v58 = vadd.f32 %v4512_v46, %v3755_v52  ;;  %v2848_v6 = vpop.eup %2847 }
 0x271   : > { %1925 = vmatmul.f32.gmra.mxu0 %v1538_v61  ;;  %2664 = vmatmul.msk.f32.gmra.mxu1 %vm1631_vm3, %v1539_v41  ;;  %v2850_v31 = vpop.eup %2849 }
 0x272   : > { %2258 = vst.msk [vmem:[%s3981_s9 + $0x58] sm:$0xff] %vm2246_vm4, %v2088_v10  ;;  %2853 = vtanh.f32 %v832_v58 }
 0x273   : > { %2551 = vmatmul.msk.f32.gmra.mxu2 %vm306_vm1, %v2987_v57  ;;  %2616 = vmatmul.msk.f32.gmra.mxu3 %vm306_vm1, %v2987_v57 }
 0x276   : > { %v1039_v39 = vpop.f32.mrf.mxu2  ;;  %v1248_v21 = vpop.f32.mrf.mxu3 }
 0x277   : > { %v1540_v15 = vmul.f32 %v2832_v51, %v1039_v39  ;;  %v1541_v20 = vmul.f32 %v2834_v9, %v1248_v21  ;;  %v1881_v4 = vpop.f32.mrf.mxu0  ;;  %v2090_v48 = vpop.f32.mrf.mxu1  ;;  %v626_v51 = vadd.f32 %v4513_v36, %v3753_v53  ;;  %v2992_v9 = vld [vmem:[%s3095_s20 + $0x188] sm:$0xff] }
 0x278   : > { %v2091_v8 = vadd.f32 %v2090_v48, %v1881_v4  ;;  %v4514_v39 = vld [vmem:[#allocation7_spill] sm:$0xff] }
 0x279   : > { %1928 = vmatmul.f32.gmra.mxu0 %v1540_v15  ;;  %2665 = vmatmul.msk.f32.gmra.mxu1 %vm1631_vm3, %v1541_v20  ;;  %v835_v21 = vadd.f32 %v4514_v39, %v3755_v52  ;;  %v2852_v15 = vpop.eup %2851  ;;  %2855 = vtanh.f32 %v626_v51 }
 0x27a   : > { %2259 = vst.msk [vmem:[%s3981_s9 + $0x60] sm:$0xff] %vm2246_vm4, %v2091_v8  ;;  %v2854_v20 = vpop.eup %2853 }
 0x27b   : > { %2552 = vmatmul.msk.f32.gmra.mxu2 %vm306_vm1, %v2988_v16  ;;  %2617 = vmatmul.msk.f32.gmra.mxu3 %vm306_vm1, %v2988_v16  ;;  %2857 = vtanh.f32 %v835_v21 }
 0x27e   : > { %v1042_v28 = vpop.f32.mrf.mxu2  ;;  %v1251_v30 = vpop.f32.mrf.mxu3 }
 0x27f   : > { %v1542_v47 = vmul.f32 %v2836_v22, %v1042_v28  ;;  %v1543_v55 = vmul.f32 %v2838_v34, %v1251_v30  ;;  %v1884_v49 = vpop.f32.mrf.mxu0  ;;  %v2093_v38 = vpop.f32.mrf.mxu1  ;;  %v4515_v34 = vld [vmem:[#allocation8_spill] sm:$0xff] }
 0x280   : > { %v2094_v3 = vadd.f32 %v2093_v38, %v1884_v49  ;;  %v629_v28 = vadd.f32 %v4515_v34, %v3753_v53  ;;  %v2993_v30 = vld [vmem:[%s3095_s20 + $0x190] sm:$0xff]  ;;  %v2856_v49 = vpop.eup %2855 }
 0x281   : > { %1931 = vmatmul.f32.gmra.mxu0 %v1542_v47  ;;  %2666 = vmatmul.msk.f32.gmra.mxu1 %vm1631_vm3, %v1543_v55  ;;  %v4516_v47 = vld [vmem:[#allocation9_spill] sm:$0xff]  ;;  %v2858_v38 = vpop.eup %2857 }
 0x282   : > { %2260 = vst.msk [vmem:[%s3981_s9 + $0x68] sm:$0xff] %vm2246_vm4, %v2094_v3  ;;  %v838_v55 = vadd.f32 %v4516_v47, %v3755_v52  ;;  %2859 = vtanh.f32 %v629_v28 }
 0x283   : > { %2553 = vmatmul.msk.f32.gmra.mxu2 %vm306_vm1, %v2989_v26  ;;  %2618 = vmatmul.msk.f32.gmra.mxu3 %vm306_vm1, %v2989_v26 }
 0x284   : > { %2861 = vtanh.f32 %v838_v55 }
 0x286   : > { %v1045_v18 = vpop.f32.mrf.mxu2  ;;  %v1254_v19 = vpop.f32.mrf.mxu3 }
 0x287   : > { %v1544_v25 = vmul.f32 %v2840_v62, %v1045_v18  ;;  %v1545_v44 = vmul.f32 %v2842_v33, %v1254_v19  ;;  %v1887_v14 = vpop.f32.mrf.mxu0  ;;  %v2096_v32 = vpop.f32.mrf.mxu1  ;;  %v4517_v19 = vld [vmem:[#allocation10_spill] sm:$0xff] }
 0x288   : > { %v2097_v60 = vadd.f32 %v2096_v32, %v1887_v14  ;;  %v4518_v14 = vld [vmem:[#allocation11_spill] sm:$0xff] }
 0x289   : > { %1934 = vmatmul.f32.gmra.mxu0 %v1544_v25  ;;  %2667 = vmatmul.msk.f32.gmra.mxu1 %vm1631_vm3, %v1545_v44  ;;  %v632_v25 = vadd.f32 %v4517_v19, %v3753_v53  ;;  %v2994_v44 = vld [vmem:[%s3095_s20 + $0x198] sm:$0xff]  ;;  %v841_v32 = vadd.f32 %v4518_v14, %v3755_v52 }
 0x28a   : > { %2261 = vst.msk [vmem:[%s3981_s9 + $0x70] sm:$0xff] %vm2246_vm4, %v2097_v60  ;;  %v2860_v60 = vpop.eup %2859 }
 0x28b   : > { %2554 = vmatmul.msk.f32.gmra.mxu2 %vm306_vm1, %v2990_v29  ;;  %2619 = vmatmul.msk.f32.gmra.mxu3 %vm306_vm1, %v2990_v29  ;;  %v2862_v23 = vpop.eup %2861  ;;  %2863 = vtanh.f32 %v632_v25 }
 0x28c   : > { %2865 = vtanh.f32 %v841_v32 }
 0x28e   : > { %v1048_v59 = vpop.f32.mrf.mxu2  ;;  %v1257_v7 = vpop.f32.mrf.mxu3 }
 0x28f   : > { %v1546_v54 = vmul.f32 %v2844_v42, %v1048_v59  ;;  %v1547_v12 = vmul.f32 %v2846_v17, %v1257_v7  ;;  %v1890_v13 = vpop.f32.mrf.mxu0  ;;  %v2099_v2 = vpop.f32.mrf.mxu1  ;;  %v4519_v7 = vld [vmem:[#allocation12_spill] sm:$0xff] }
 0x290   : > { %v2100_v24 = vadd.f32 %v2099_v2, %v1890_v13  ;;  %v4520_v13 = vld [vmem:[#allocation13_spill] sm:$0xff] }
 0x291   : > { %1937 = vmatmul.f32.gmra.mxu0 %v1546_v54  ;;  %2668 = vmatmul.msk.f32.gmra.mxu1 %vm1631_vm3, %v1547_v12  ;;  %v635_v54 = vadd.f32 %v4519_v7, %v3753_v53  ;;  %v2995_v12 = vld [vmem:[%s3095_s20 + $0x1a0] sm:$0xff]  ;;  %v844_v2 = vadd.f32 %v4520_v13, %v3755_v52 }
 0x292   : > { %2262 = vst.msk [vmem:[%s3981_s9 + $0x78] sm:$0xff] %vm2246_vm4, %v2100_v24  ;;  %v2864_v24 = vpop.eup %2863 }
 0x293   : > { %2555 = vmatmul.msk.f32.gmra.mxu2 %vm306_vm1, %v2991_v11  ;;  %2620 = vmatmul.msk.f32.gmra.mxu3 %vm306_vm1, %v2991_v11  ;;  %v2866_v5 = vpop.eup %2865  ;;  %2867 = vtanh.f32 %v635_v54 }
 0x294   : > { %2869 = vtanh.f32 %v844_v2 }
 0x296   : > { %v1051_v61 = vpop.f32.mrf.mxu2  ;;  %v1260_v41 = vpop.f32.mrf.mxu3 }
 0x297   : > { %v1548_v56 = vmul.f32 %v2848_v6, %v1051_v61  ;;  %v1549_v45 = vmul.f32 %v2850_v31, %v1260_v41  ;;  %v1893_v10 = vpop.f32.mrf.mxu0  ;;  %v2102_v27 = vpop.f32.mrf.mxu1  ;;  %v4521_v41 = vld [vmem:[#allocation14_spill] sm:$0xff] }
 0x298   : > { %v2103_v57 = vadd.f32 %v2102_v27, %v1893_v10  ;;  %v4522_v10 = vld [vmem:[#allocation15_spill] sm:$0xff] }
 0x299   : > { %1940 = vmatmul.f32.gmra.mxu0 %v1548_v56  ;;  %2669 = vmatmul.msk.f32.gmra.mxu1 %vm1631_vm3, %v1549_v45  ;;  %v638_v56 = vadd.f32 %v4521_v41, %v3753_v53  ;;  %v2996_v45 = vld [vmem:[%s3095_s20 + $0x1a8] sm:$0xff]  ;;  %v847_v27 = vadd.f32 %v4522_v10, %v3755_v52 }
 0x29a   : > { %2263 = vst.msk [vmem:[%s3981_s9 + $0x80] sm:$0xff] %vm2246_vm4, %v2103_v57  ;;  %v2868_v57 = vpop.eup %2867 }
 0x29b   : > { %2556 = vmatmul.msk.f32.gmra.mxu2 %vm306_vm1, %v2992_v9  ;;  %2621 = vmatmul.msk.f32.gmra.mxu3 %vm306_vm1, %v2992_v9  ;;  %v2870_v36 = vpop.eup %2869  ;;  %2871 = vtanh.f32 %v638_v56 }
 0x29c   : > { %2873 = vtanh.f32 %v847_v27 }
 0x29e   : > { %v1054_v4 = vpop.f32.mrf.mxu2  ;;  %v1263_v48 = vpop.f32.mrf.mxu3 }
 0x29f   : > { %v1550_v8 = vmul.f32 %v2852_v15, %v1054_v4  ;;  %v1551_v35 = vmul.f32 %v2854_v20, %v1263_v48  ;;  %v1896_v16 = vpop.f32.mrf.mxu0  ;;  %v2105_v37 = vpop.f32.mrf.mxu1  ;;  %v4523_v48 = vld [vmem:[#allocation16_spill] sm:$0xff] }
 0x2a0   : > { %v2106_v22 = vadd.f32 %v2105_v37, %v1896_v16  ;;  %v4524_v16 = vld [vmem:[#allocation17_spill] sm:$0xff] }
 0x2a1   : > { %1943 = vmatmul.f32.gmra.mxu0 %v1550_v8  ;;  %2670 = vmatmul.msk.f32.gmra.mxu1 %vm1631_vm3, %v1551_v35  ;;  %v641_v8 = vadd.f32 %v4523_v48, %v3753_v53  ;;  %v2997_v35 = vld [vmem:[%s3095_s20 + $0x1b0] sm:$0xff]  ;;  %v850_v37 = vadd.f32 %v4524_v16, %v3755_v52 }
 0x2a2   : > { %2264 = vst.msk [vmem:[%s3981_s9 + $0x88] sm:$0xff] %vm2246_vm4, %v2106_v22  ;;  %v2872_v22 = vpop.eup %2871 }
 0x2a3   : > { %2557 = vmatmul.msk.f32.gmra.mxu2 %vm306_vm1, %v2993_v30  ;;  %2622 = vmatmul.msk.f32.gmra.mxu3 %vm306_vm1, %v2993_v30  ;;  %v2874_v34 = vpop.eup %2873  ;;  %2875 = vtanh.f32 %v641_v8 }
 0x2a4   : > { %2877 = vtanh.f32 %v850_v37 }
 0x2a6   : > { %v1057_v3 = vpop.f32.mrf.mxu2  ;;  %v1266_v50 = vpop.f32.mrf.mxu3 }
 0x2a7   : > { %v1552_v26 = vmul.f32 %v2856_v49, %v1057_v3  ;;  %v1553_v43 = vmul.f32 %v2858_v38, %v1266_v50  ;;  %v1899_v62 = vpop.f32.mrf.mxu0  ;;  %v2108_v33 = vpop.f32.mrf.mxu1  ;;  %v4525_v50 = vld [vmem:[#allocation18_spill] sm:$0xff] }
 0x2a8   : > { %v2109_v18 = vadd.f32 %v2108_v33, %v1899_v62  ;;  %v4526_v62 = vld [vmem:[#allocation19_spill] sm:$0xff] }
 0x2a9   : > { %1946 = vmatmul.f32.gmra.mxu0 %v1552_v26  ;;  %2671 = vmatmul.msk.f32.gmra.mxu1 %vm1631_vm3, %v1553_v43  ;;  %v644_v26 = vadd.f32 %v4525_v50, %v3753_v53  ;;  %v2998_v43 = vld [vmem:[%s3095_s20 + $0x1b8] sm:$0xff]  ;;  %v853_v33 = vadd.f32 %v4526_v62, %v3755_v52 }
 0x2aa   : > { %2265 = vst.msk [vmem:[%s3981_s9 + $0x90] sm:$0xff] %vm2246_vm4, %v2109_v18  ;;  %v2876_v18 = vpop.eup %2875 }
 0x2ab   : > { %2558 = vmatmul.msk.f32.gmra.mxu2 %vm306_vm1, %v2994_v44  ;;  %2623 = vmatmul.msk.f32.gmra.mxu3 %vm306_vm1, %v2994_v44  ;;  %v2878_v19 = vpop.eup %2877  ;;  %2879 = vtanh.f32 %v644_v26 }
 0x2ac   : > { %2881 = vtanh.f32 %v853_v33 }
 0x2ae   : > { %v1060_v1 = vpop.f32.mrf.mxu2  ;;  %v1269_v29 = vpop.f32.mrf.mxu3 }
 0x2af   : > { %v1554_v63 = vmul.f32 %v2860_v60, %v1060_v1  ;;  %v1555_v0 = vmul.f32 %v2862_v23, %v1269_v29  ;;  %v1902_v42 = vpop.f32.mrf.mxu0  ;;  %v2111_v17 = vpop.f32.mrf.mxu1  ;;  %v4527_v29 = vld [vmem:[#allocation20_spill] sm:$0xff] }
 0x2b0   : > { %v2112_v59 = vadd.f32 %v2111_v17, %v1902_v42  ;;  %v4528_v42 = vld [vmem:[#allocation21_spill] sm:$0xff] }
 0x2b1   : > { %1949 = vmatmul.f32.gmra.mxu0 %v1554_v63  ;;  %2672 = vmatmul.msk.f32.gmra.mxu1 %vm1631_vm3, %v1555_v0  ;;  %v647_v63 = vadd.f32 %v4527_v29, %v3753_v53  ;;  %v2999_v0 = vld [vmem:[%s3095_s20 + $0x1c0] sm:$0xff]  ;;  %v856_v17 = vadd.f32 %v4528_v42, %v3755_v52 }
 0x2b2   : > { %2266 = vst.msk [vmem:[%s3981_s9 + $0x98] sm:$0xff] %vm2246_vm4, %v2112_v59  ;;  %v2880_v59 = vpop.eup %2879 }
 0x2b3   : > { %2559 = vmatmul.msk.f32.gmra.mxu2 %vm306_vm1, %v2995_v12  ;;  %2624 = vmatmul.msk.f32.gmra.mxu3 %vm306_vm1, %v2995_v12  ;;  %v2882_v7 = vpop.eup %2881  ;;  %2883 = vtanh.f32 %v647_v63 }
 0x2b4   : > { %2885 = vtanh.f32 %v856_v17 }
 0x2b6   : > { %v1063_v40 = vpop.f32.mrf.mxu2  ;;  %v1272_v11 = vpop.f32.mrf.mxu3 }
 0x2b7   : > { %v1556_v46 = vmul.f32 %v2864_v24, %v1063_v40  ;;  %v1557_v58 = vmul.f32 %v2866_v5, %v1272_v11  ;;  %v1905_v6 = vpop.f32.mrf.mxu0  ;;  %v2114_v31 = vpop.f32.mrf.mxu1  ;;  %v4529_v11 = vld [vmem:[#allocation22_spill] sm:$0xff] }
 0x2b8   : > { %v2115_v61 = vadd.f32 %v2114_v31, %v1905_v6  ;;  %v4530_v6 = vld [vmem:[#allocation23_spill] sm:$0xff] }
 0x2b9   : > { %1952 = vmatmul.f32.gmra.mxu0 %v1556_v46  ;;  %2673 = vmatmul.msk.f32.gmra.mxu1 %vm1631_vm3, %v1557_v58  ;;  %v650_v46 = vadd.f32 %v4529_v11, %v3753_v53  ;;  %v3000_v58 = vld [vmem:[%s3095_s20 + $0x1c8] sm:$0xff]  ;;  %v859_v31 = vadd.f32 %v4530_v6, %v3755_v52 }
 0x2ba   : > { %2267 = vst.msk [vmem:[%s3981_s9 + $0xa0] sm:$0xff] %vm2246_vm4, %v2115_v61  ;;  %v2884_v61 = vpop.eup %2883 }
 0x2bb   : > { %2560 = vmatmul.msk.f32.gmra.mxu2 %vm306_vm1, %v2996_v45  ;;  %2625 = vmatmul.msk.f32.gmra.mxu3 %vm306_vm1, %v2996_v45  ;;  %v2886_v41 = vpop.eup %2885  ;;  %2887 = vtanh.f32 %v650_v46 }
 0x2bc   : > { %2889 = vtanh.f32 %v859_v31 }
 0x2be   : > { %v1066_v51 = vpop.f32.mrf.mxu2  ;;  %v1275_v9 = vpop.f32.mrf.mxu3 }
 0x2bf   : > { %v1558_v39 = vmul.f32 %v2868_v57, %v1066_v51  ;;  %v1559_v21 = vmul.f32 %v2870_v36, %v1275_v9  ;;  %v1908_v15 = vpop.f32.mrf.mxu0  ;;  %v2117_v20 = vpop.f32.mrf.mxu1  ;;  %v4531_v9 = vld [vmem:[#allocation24_spill] sm:$0xff] }
 0x2c0   : > { %v2118_v4 = vadd.f32 %v2117_v20, %v1908_v15  ;;  %v4532_v15 = vld [vmem:[#allocation25_spill] sm:$0xff] }
 0x2c1   : > { %1955 = vmatmul.f32.gmra.mxu0 %v1558_v39  ;;  %2674 = vmatmul.msk.f32.gmra.mxu1 %vm1631_vm3, %v1559_v21  ;;  %v653_v39 = vadd.f32 %v4531_v9, %v3753_v53  ;;  %v3001_v21 = vld [vmem:[%s3095_s20 + $0x1d0] sm:$0xff]  ;;  %v862_v20 = vadd.f32 %v4532_v15, %v3755_v52 }
 0x2c2   : > { %2268 = vst.msk [vmem:[%s3981_s9 + $0xa8] sm:$0xff] %vm2246_vm4, %v2118_v4  ;;  %v2888_v4 = vpop.eup %2887 }
 0x2c3   : > { %2561 = vmatmul.msk.f32.gmra.mxu2 %vm306_vm1, %v2997_v35  ;;  %2626 = vmatmul.msk.f32.gmra.mxu3 %vm306_vm1, %v2997_v35  ;;  %v2890_v48 = vpop.eup %2889  ;;  %2891 = vtanh.f32 %v653_v39 }
 0x2c4   : > { %2893 = vtanh.f32 %v862_v20 }
 0x2c6   : > { %v1069_v28 = vpop.f32.mrf.mxu2  ;;  %v1278_v30 = vpop.f32.mrf.mxu3 }
 0x2c7   : > { %v1560_v47 = vmul.f32 %v2872_v22, %v1069_v28  ;;  %v1561_v55 = vmul.f32 %v2874_v34, %v1278_v30  ;;  %v1911_v49 = vpop.f32.mrf.mxu0  ;;  %v2120_v38 = vpop.f32.mrf.mxu1  ;;  %v4533_v30 = vld [vmem:[#allocation26_spill] sm:$0xff] }
 0x2c8   : > { %v2121_v3 = vadd.f32 %v2120_v38, %v1911_v49  ;;  %v4534_v49 = vld [vmem:[#allocation27_spill] sm:$0xff] }
 0x2c9   : > { %1958 = vmatmul.f32.gmra.mxu0 %v1560_v47  ;;  %2675 = vmatmul.msk.f32.gmra.mxu1 %vm1631_vm3, %v1561_v55  ;;  %v656_v47 = vadd.f32 %v4533_v30, %v3753_v53  ;;  %v3002_v55 = vld [vmem:[%s3095_s20 + $0x1d8] sm:$0xff]  ;;  %v865_v38 = vadd.f32 %v4534_v49, %v3755_v52 }
 0x2ca   : > { %2269 = vst.msk [vmem:[%s3981_s9 + $0xb0] sm:$0xff] %vm2246_vm4, %v2121_v3  ;;  %v2892_v3 = vpop.eup %2891 }
 0x2cb   : > { %2562 = vmatmul.msk.f32.gmra.mxu2 %vm306_vm1, %v2998_v43  ;;  %2627 = vmatmul.msk.f32.gmra.mxu3 %vm306_vm1, %v2998_v43  ;;  %v2894_v50 = vpop.eup %2893  ;;  %2895 = vtanh.f32 %v656_v47 }
 0x2cc   : > { %2897 = vtanh.f32 %v865_v38 }
 0x2ce   : > { %v1072_v25 = vpop.f32.mrf.mxu2  ;;  %v1281_v44 = vpop.f32.mrf.mxu3 }
 0x2cf   : > { %v1562_v14 = vmul.f32 %v2876_v18, %v1072_v25  ;;  %v1563_v32 = vmul.f32 %v2878_v19, %v1281_v44  ;;  %v1914_v60 = vpop.f32.mrf.mxu0  ;;  %v2123_v23 = vpop.f32.mrf.mxu1  ;;  %v4535_v44 = vld [vmem:[#allocation28_spill] sm:$0xff] }
 0x2d0   : > { %v2124_v1 = vadd.f32 %v2123_v23, %v1914_v60  ;;  %v4536_v60 = vld [vmem:[#allocation29_spill] sm:$0xff] }
 0x2d1   : > { %1961 = vmatmul.f32.gmra.mxu0 %v1562_v14  ;;  %2676 = vmatmul.msk.f32.gmra.mxu1 %vm1631_vm3, %v1563_v32  ;;  %v659_v14 = vadd.f32 %v4535_v44, %v3753_v53  ;;  %v3003_v32 = vld [vmem:[%s3095_s20 + $0x1e0] sm:$0xff]  ;;  %v868_v23 = vadd.f32 %v4536_v60, %v3755_v52 }
 0x2d2   : > { %2270 = vst.msk [vmem:[%s3981_s9 + $0xb8] sm:$0xff] %vm2246_vm4, %v2124_v1  ;;  %v2896_v1 = vpop.eup %2895 }
 0x2d3   : > { %2563 = vmatmul.msk.f32.gmra.mxu2 %vm306_vm1, %v2999_v0  ;;  %2628 = vmatmul.msk.f32.gmra.mxu3 %vm306_vm1, %v2999_v0  ;;  %v2898_v29 = vpop.eup %2897  ;;  %2899 = vtanh.f32 %v659_v14 }
 0x2d4   : > { %2901 = vtanh.f32 %v868_v23 }
 0x2d6   : > { %v1075_v54 = vpop.f32.mrf.mxu2  ;;  %v1284_v12 = vpop.f32.mrf.mxu3 }
 0x2d7   : > { %v1564_v13 = vmul.f32 %v2880_v59, %v1075_v54  ;;  %v1565_v2 = vmul.f32 %v2882_v7, %v1284_v12  ;;  %v1917_v24 = vpop.f32.mrf.mxu0  ;;  %v2126_v5 = vpop.f32.mrf.mxu1  ;;  %v4537_v12 = vld [vmem:[#allocation30_spill] sm:$0xff] }
 0x2d8   : > { %v2127_v40 = vadd.f32 %v2126_v5, %v1917_v24  ;;  %v4538_v24 = vld [vmem:[#allocation31_spill] sm:$0xff] }
 0x2d9   : > { %1964 = vmatmul.f32.gmra.mxu0 %v1564_v13  ;;  %2677 = vmatmul.msk.f32.gmra.mxu1 %vm1631_vm3, %v1565_v2  ;;  %v662_v13 = vadd.f32 %v4537_v12, %v3753_v53  ;;  %v3004_v2 = vld [vmem:[%s3095_s20 + $0x1e8] sm:$0xff]  ;;  %v871_v5 = vadd.f32 %v4538_v24, %v3755_v52 }
 0x2da   : > { %2271 = vst.msk [vmem:[%s3981_s9 + $0xc0] sm:$0xff] %vm2246_vm4, %v2127_v40  ;;  %v2900_v40 = vpop.eup %2899 }
 0x2db   : > { %2564 = vmatmul.msk.f32.gmra.mxu2 %vm306_vm1, %v3000_v58  ;;  %2629 = vmatmul.msk.f32.gmra.mxu3 %vm306_vm1, %v3000_v58  ;;  %v2902_v11 = vpop.eup %2901  ;;  %2903 = vtanh.f32 %v662_v13 }
 0x2dc   : > { %2905 = vtanh.f32 %v871_v5 }
 0x2de   : > { %v1078_v56 = vpop.f32.mrf.mxu2  ;;  %v1287_v45 = vpop.f32.mrf.mxu3 }
 0x2df   : > { %v1566_v10 = vmul.f32 %v2884_v61, %v1078_v56  ;;  %v1567_v27 = vmul.f32 %v2886_v41, %v1287_v45  ;;  %v1920_v57 = vpop.f32.mrf.mxu0  ;;  %v2129_v36 = vpop.f32.mrf.mxu1  ;;  %v4539_v45 = vld [vmem:[#allocation32_spill] sm:$0xff] }
 0x2e0   : > { %v2130_v51 = vadd.f32 %v2129_v36, %v1920_v57  ;;  %v4540_v57 = vld [vmem:[#allocation33_spill] sm:$0xff] }
 0x2e1   : > { %1967 = vmatmul.f32.gmra.mxu0 %v1566_v10  ;;  %2678 = vmatmul.msk.f32.gmra.mxu1 %vm1631_vm3, %v1567_v27  ;;  %v665_v10 = vadd.f32 %v4539_v45, %v3753_v53  ;;  %v3005_v27 = vld [vmem:[%s3095_s20 + $0x1f0] sm:$0xff]  ;;  %v874_v36 = vadd.f32 %v4540_v57, %v3755_v52 }
 0x2e2   : > { %2272 = vst.msk [vmem:[%s3981_s9 + $0xc8] sm:$0xff] %vm2246_vm4, %v2130_v51  ;;  %v2904_v51 = vpop.eup %2903 }
 0x2e3   : > { %2565 = vmatmul.msk.f32.gmra.mxu2 %vm306_vm1, %v3001_v21  ;;  %2630 = vmatmul.msk.f32.gmra.mxu3 %vm306_vm1, %v3001_v21  ;;  %v2906_v9 = vpop.eup %2905  ;;  %2907 = vtanh.f32 %v665_v10 }
 0x2e4   : > { %2909 = vtanh.f32 %v874_v36 }
 0x2e6   : > { %v1081_v8 = vpop.f32.mrf.mxu2  ;;  %v1290_v35 = vpop.f32.mrf.mxu3 }
 0x2e7   : > { %v1568_v16 = vmul.f32 %v2888_v4, %v1081_v8  ;;  %v1569_v37 = vmul.f32 %v2890_v48, %v1290_v35  ;;  %v1923_v22 = vpop.f32.mrf.mxu0  ;;  %v2132_v34 = vpop.f32.mrf.mxu1  ;;  %v4541_v35 = vld [vmem:[#allocation34_spill] sm:$0xff] }
 0x2e8   : > { %v2133_v28 = vadd.f32 %v2132_v34, %v1923_v22  ;;  %v4542_v22 = vld [vmem:[#allocation35_spill] sm:$0xff] }
 0x2e9   : > { %1970 = vmatmul.f32.gmra.mxu0 %v1568_v16  ;;  %2679 = vmatmul.msk.f32.gmra.mxu1 %vm1631_vm3, %v1569_v37  ;;  %v668_v16 = vadd.f32 %v4541_v35, %v3753_v53  ;;  %v3006_v37 = vld [vmem:[%s3095_s20 + $0x1f8] sm:$0xff]  ;;  %v877_v34 = vadd.f32 %v4542_v22, %v3755_v52 }
 0x2ea   : > { %2273 = vst.msk [vmem:[%s3981_s9 + $0xd0] sm:$0xff] %vm2246_vm4, %v2133_v28  ;;  %v2908_v28 = vpop.eup %2907 }
 0x2eb   : > { %2566 = vmatmul.msk.f32.gmra.mxu2 %vm306_vm1, %v3002_v55  ;;  %2631 = vmatmul.msk.f32.gmra.mxu3 %vm306_vm1, %v3002_v55  ;;  %v2910_v30 = vpop.eup %2909  ;;  %2911 = vtanh.f32 %v668_v16 }
 0x2ec   : > { %2913 = vtanh.f32 %v877_v34  ;;  %v4551_v34 = vld [vmem:[#allocation44_spill] sm:$0xff] }
 0x2ee   : > { %v1084_v26 = vpop.f32.mrf.mxu2  ;;  %v1293_v43 = vpop.f32.mrf.mxu3 }
 0x2ef   : > { %v1570_v62 = vmul.f32 %v2892_v3, %v1084_v26  ;;  %v1571_v33 = vmul.f32 %v2894_v50, %v1293_v43  ;;  %v1926_v18 = vpop.f32.mrf.mxu0  ;;  %v2135_v19 = vpop.f32.mrf.mxu1  ;;  %v4543_v43 = vld [vmem:[#allocation36_spill] sm:$0xff] }
 0x2f0   : > { %v2136_v25 = vadd.f32 %v2135_v19, %v1926_v18 }
 0x2f1   : > { %1973 = vmatmul.f32.gmra.mxu0 %v1570_v62  ;;  %2680 = vmatmul.msk.f32.gmra.mxu1 %vm1631_vm3, %v1571_v33  ;;  %v671_v62 = vadd.f32 %v4543_v43, %v3753_v53  ;;  %v4544_v33 = vld [vmem:[#allocation37_spill] sm:$0xff]  ;;  %v2912_v19 = vpop.eup %2911 }
 0x2f2   : > { %2274 = vst.msk [vmem:[%s3981_s9 + $0xd8] sm:$0xff] %vm2246_vm4, %v2136_v25  ;;  %v880_v18 = vadd.f32 %v4544_v33, %v3755_v52  ;;  %v2914_v25 = vpop.eup %2913 }
 0x2f3   : > { %2567 = vmatmul.msk.f32.gmra.mxu2 %vm306_vm1, %v3003_v32  ;;  %2632 = vmatmul.msk.f32.gmra.mxu3 %vm306_vm1, %v3003_v32  ;;  %2915 = vtanh.f32 %v671_v62 }
 0x2f4   : > { %2917 = vtanh.f32 %v880_v18  ;;  %v4553_v18 = vld [vmem:[#allocation46_spill] sm:$0xff] }
 0x2f6   : > { %v1087_v63 = vpop.f32.mrf.mxu2  ;;  %v1296_v0 = vpop.f32.mrf.mxu3 }
 0x2f7   : > { %v1572_v42 = vmul.f32 %v2896_v1, %v1087_v63  ;;  %v1573_v17 = vmul.f32 %v2898_v29, %v1296_v0  ;;  %v1929_v59 = vpop.f32.mrf.mxu0  ;;  %v2138_v7 = vpop.f32.mrf.mxu1  ;;  %v4545_v63 = vld [vmem:[#allocation38_spill] sm:$0xff] }
 0x2f8   : > { %v2139_v54 = vadd.f32 %v2138_v7, %v1929_v59  ;;  %v674_v0 = vadd.f32 %v4545_v63, %v3753_v53 }
 0x2f9   : > { %1976 = vmatmul.f32.gmra.mxu0 %v1572_v42  ;;  %2681 = vmatmul.msk.f32.gmra.mxu1 %vm1631_vm3, %v1573_v17  ;;  %v4546_v42 = vld [vmem:[#allocation39_spill] sm:$0xff]  ;;  %v2916_v59 = vpop.eup %2915 }
 0x2fa   : > { %2275 = vst.msk [vmem:[%s3981_s9 + $0xe0] sm:$0xff] %vm2246_vm4, %v2139_v54  ;;  %v883_v17 = vadd.f32 %v4546_v42, %v3755_v52  ;;  %v2918_v7 = vpop.eup %2917  ;;  %2919 = vtanh.f32 %v674_v0 }
 0x2fb   : > { %2568 = vmatmul.msk.f32.gmra.mxu2 %vm306_vm1, %v3004_v2  ;;  %2633 = vmatmul.msk.f32.gmra.mxu3 %vm306_vm1, %v3004_v2 }
 0x2fc   : > { %2921 = vtanh.f32 %v883_v17  ;;  %v4555_v17 = vld [vmem:[#allocation48_spill] sm:$0xff] }
 0x2fe   : > { %v1090_v46 = vpop.f32.mrf.mxu2  ;;  %v1299_v58 = vpop.f32.mrf.mxu3 }
 0x2ff   : > { %v1574_v6 = vmul.f32 %v2900_v40, %v1090_v46  ;;  %v1575_v31 = vmul.f32 %v2902_v11, %v1299_v58  ;;  %v1932_v61 = vpop.f32.mrf.mxu0  ;;  %v2141_v41 = vpop.f32.mrf.mxu1  ;;  %v4547_v11 = vld [vmem:[#allocation40_spill] sm:$0xff]  ;;  %v4548_v58 = vld [vmem:[#allocation41_spill] sm:$0xff] }
 0x300   : > { %v2142_v56 = vadd.f32 %v2141_v41, %v1932_v61  ;;  %v677_v46 = vadd.f32 %v4547_v11, %v3753_v53 }
 0x301   : > { %1979 = vmatmul.f32.gmra.mxu0 %v1574_v6  ;;  %2682 = vmatmul.msk.f32.gmra.mxu1 %vm1631_vm3, %v1575_v31  ;;  %v886_v6 = vadd.f32 %v4548_v58, %v3755_v52  ;;  %v2920_v31 = vpop.eup %2919 }
 0x302   : > { %2276 = vst.msk [vmem:[%s3981_s9 + $0xe8] sm:$0xff] %vm2246_vm4, %v2142_v56  ;;  %v2922_v61 = vpop.eup %2921  ;;  %2923 = vtanh.f32 %v677_v46 }
 0x303   : > { %2569 = vmatmul.msk.f32.gmra.mxu2 %vm306_vm1, %v3005_v27  ;;  %2634 = vmatmul.msk.f32.gmra.mxu3 %vm306_vm1, %v3005_v27  ;;  %2925 = vtanh.f32 %v886_v6  ;;  %v4557_v6 = vld [vmem:[#allocation50_spill] sm:$0xff] }
 0x306   : > { %v1093_v39 = vpop.f32.mrf.mxu2  ;;  %v1302_v21 = vpop.f32.mrf.mxu3 }
 0x307   : > { %v1576_v15 = vmul.f32 %v2904_v51, %v1093_v39  ;;  %v1577_v20 = vmul.f32 %v2906_v9, %v1302_v21  ;;  %v1935_v4 = vpop.f32.mrf.mxu0  ;;  %v2144_v48 = vpop.f32.mrf.mxu1  ;;  %v4549_v51 = vld [vmem:[#allocation42_spill] sm:$0xff]  ;;  %v4550_v39 = vld [vmem:[#allocation43_spill] sm:$0xff] }
 0x308   : > { %v2145_v8 = vadd.f32 %v2144_v48, %v1935_v4  ;;  %v680_v9 = vadd.f32 %v4549_v51, %v3753_v53  ;;  %v889_v21 = vadd.f32 %v4550_v39, %v3755_v52 }
 0x309   : > { %1982 = vmatmul.f32.gmra.mxu0 %v1576_v15  ;;  %2683 = vmatmul.msk.f32.gmra.mxu1 %vm1631_vm3, %v1577_v20  ;;  %v2924_v15 = vpop.eup %2923 }
 0x30a   : > { %2277 = vst.msk [vmem:[%s3981_s9 + $0xf0] sm:$0xff] %vm2246_vm4, %v2145_v8  ;;  %v2926_v20 = vpop.eup %2925  ;;  %2927 = vtanh.f32 %v680_v9 }
 0x30b   : > { %2570 = vmatmul.msk.f32.gmra.mxu2 %vm306_vm1, %v3006_v37  ;;  %2635 = vmatmul.msk.f32.gmra.mxu3 %vm306_vm1, %v3006_v37  ;;  %2929 = vtanh.f32 %v889_v21  ;;  %v4559_v21 = vld [vmem:[#allocation52_spill] sm:$0xff] }
 0x30e   : > { %v1096_v47 = vpop.f32.mrf.mxu2  ;;  %v1305_v55 = vpop.f32.mrf.mxu3 }
 0x30f   : > { %v1578_v49 = vmul.f32 %v2908_v28, %v1096_v47  ;;  %v1579_v38 = vmul.f32 %v2910_v30, %v1305_v55  ;;  %v1938_v3 = vpop.f32.mrf.mxu0  ;;  %v2147_v50 = vpop.f32.mrf.mxu1  ;;  %v683_v28 = vadd.f32 %v4551_v34, %v3753_v53  ;;  %v4552_v30 = vld [vmem:[#allocation45_spill] sm:$0xff] }
 0x310   : > { %v2148_v26 = vadd.f32 %v2147_v50, %v1938_v3  ;;  %v892_v47 = vadd.f32 %v4552_v30, %v3755_v52  ;;  %v2928_v55 = vpop.eup %2927 }
 0x311   : > { %1985 = vmatmul.f32.gmra.mxu0 %v1578_v49  ;;  %2684 = vmatmul.msk.f32.gmra.mxu1 %vm1631_vm3, %v1579_v38  ;;  %v2930_v49 = vpop.eup %2929  ;;  %2931 = vtanh.f32 %v683_v28 }
 0x312   : > { %2278 = vst.msk [vmem:[%s3981_s9 + $0xf8] sm:$0xff] %vm2246_vm4, %v2148_v26  ;;  %2933 = vtanh.f32 %v892_v47  ;;  %v4561_v47 = vld [vmem:[#allocation54_spill] sm:$0xff] }
 0x316   : > { %v1099_v44 = vpop.f32.mrf.mxu2  ;;  %v1308_v14 = vpop.f32.mrf.mxu3 }
 0x317   : > { %v1580_v32 = vmul.f32 %v2912_v19, %v1099_v44  ;;  %v1581_v60 = vmul.f32 %v2914_v25, %v1308_v14  ;;  %v1941_v23 = vpop.f32.mrf.mxu0  ;;  %v2150_v1 = vpop.f32.mrf.mxu1  ;;  %v686_v19 = vadd.f32 %v4553_v18, %v3753_v53  ;;  %v4554_v25 = vld [vmem:[#allocation47_spill] sm:$0xff] }
 0x318   : > { %v2151_v29 = vadd.f32 %v2150_v1, %v1941_v23  ;;  %v895_v44 = vadd.f32 %v4554_v25, %v3755_v52  ;;  %v2932_v14 = vpop.eup %2931 }
 0x319   : > { %1988 = vmatmul.f32.gmra.mxu0 %v1580_v32  ;;  %2685 = vmatmul.msk.f32.gmra.mxu1 %vm1631_vm3, %v1581_v60  ;;  %v2934_v32 = vpop.eup %2933  ;;  %2935 = vtanh.f32 %v686_v19 }
 0x31a   : > { %2279 = vst.msk [vmem:[%s3981_s9 + $0x100] sm:$0xff] %vm2246_vm4, %v2151_v29  ;;  %2937 = vtanh.f32 %v895_v44  ;;  %v4563_v44 = vld [vmem:[#allocation56_spill] sm:$0xff] }
 0x31e   : > { %v1102_v54 = vpop.f32.mrf.mxu2  ;;  %v1311_v12 = vpop.f32.mrf.mxu3 }
 0x31f   : > { %v1582_v13 = vmul.f32 %v2916_v59, %v1102_v54  ;;  %v1583_v2 = vmul.f32 %v2918_v7, %v1311_v12  ;;  %v1944_v24 = vpop.f32.mrf.mxu0  ;;  %v2153_v5 = vpop.f32.mrf.mxu1  ;;  %v689_v59 = vadd.f32 %v4555_v17, %v3753_v53  ;;  %v4556_v7 = vld [vmem:[#allocation49_spill] sm:$0xff] }
 0x320   : > { %v2154_v40 = vadd.f32 %v2153_v5, %v1944_v24  ;;  %v898_v54 = vadd.f32 %v4556_v7, %v3755_v52  ;;  %v2936_v12 = vpop.eup %2935 }
 0x321   : > { %1991 = vmatmul.f32.gmra.mxu0 %v1582_v13  ;;  %2686 = vmatmul.msk.f32.gmra.mxu1 %vm1631_vm3, %v1583_v2  ;;  %v2938_v13 = vpop.eup %2937  ;;  %2939 = vtanh.f32 %v689_v59 }
 0x322   : > { %2280 = vst.msk [vmem:[%s3981_s9 + $0x108] sm:$0xff] %vm2246_vm4, %v2154_v40  ;;  %2941 = vtanh.f32 %v898_v54  ;;  %v4565_v54 = vld [vmem:[#allocation58_spill] sm:$0xff] }
 0x326   : > { %v1105_v41 = vpop.f32.mrf.mxu2  ;;  %v1314_v56 = vpop.f32.mrf.mxu3 }
 0x327   : > { %v1584_v45 = vmul.f32 %v2920_v31, %v1105_v41  ;;  %v1585_v10 = vmul.f32 %v2922_v61, %v1314_v56  ;;  %v1947_v27 = vpop.f32.mrf.mxu0  ;;  %v2156_v57 = vpop.f32.mrf.mxu1  ;;  %v692_v31 = vadd.f32 %v4557_v6, %v3753_v53  ;;  %v4558_v61 = vld [vmem:[#allocation51_spill] sm:$0xff] }
 0x328   : > { %v2157_v36 = vadd.f32 %v2156_v57, %v1947_v27  ;;  %v901_v41 = vadd.f32 %v4558_v61, %v3755_v52  ;;  %v2940_v56 = vpop.eup %2939 }
 0x329   : > { %1994 = vmatmul.f32.gmra.mxu0 %v1584_v45  ;;  %2687 = vmatmul.msk.f32.gmra.mxu1 %vm1631_vm3, %v1585_v10  ;;  %v2942_v45 = vpop.eup %2941  ;;  %2943 = vtanh.f32 %v692_v31 }
 0x32a   : > { %2281 = vst.msk [vmem:[%s3981_s9 + $0x110] sm:$0xff] %vm2246_vm4, %v2157_v36  ;;  %2945 = vtanh.f32 %v901_v41  ;;  %v4567_v41 = vld [vmem:[#allocation60_spill] sm:$0xff] }
 0x32e   : > { %v1108_v4 = vpop.f32.mrf.mxu2  ;;  %v1317_v48 = vpop.f32.mrf.mxu3 }
 0x32f   : > { %v1586_v8 = vmul.f32 %v2924_v15, %v1108_v4  ;;  %v1587_v35 = vmul.f32 %v2926_v20, %v1317_v48  ;;  %v1950_v16 = vpop.f32.mrf.mxu0  ;;  %v2159_v37 = vpop.f32.mrf.mxu1  ;;  %v695_v15 = vadd.f32 %v4559_v21, %v3753_v53  ;;  %v4560_v20 = vld [vmem:[#allocation53_spill] sm:$0xff] }
 0x330   : > { %v2160_v22 = vadd.f32 %v2159_v37, %v1950_v16  ;;  %v904_v4 = vadd.f32 %v4560_v20, %v3755_v52  ;;  %v2944_v48 = vpop.eup %2943 }
 0x331   : > { %1997 = vmatmul.f32.gmra.mxu0 %v1586_v8  ;;  %2688 = vmatmul.msk.f32.gmra.mxu1 %vm1631_vm3, %v1587_v35  ;;  %v2946_v8 = vpop.eup %2945  ;;  %2947 = vtanh.f32 %v695_v15 }
 0x332   : > { %2282 = vst.msk [vmem:[%s3981_s9 + $0x118] sm:$0xff] %vm2246_vm4, %v2160_v22  ;;  %2949 = vtanh.f32 %v904_v4  ;;  %v4569_v4 = vld [vmem:[#allocation62_spill] sm:$0xff] }
 0x336   : > { %v1111_v38 = vpop.f32.mrf.mxu2  ;;  %v1320_v3 = vpop.f32.mrf.mxu3 }
 0x337   : > { %v1588_v50 = vmul.f32 %v2928_v55, %v1111_v38  ;;  %v1589_v26 = vmul.f32 %v2930_v49, %v1320_v3  ;;  %v1953_v43 = vpop.f32.mrf.mxu0  ;;  %v2162_v62 = vpop.f32.mrf.mxu1  ;;  %v698_v55 = vadd.f32 %v4561_v47, %v3753_v53  ;;  %v4562_v49 = vld [vmem:[#allocation55_spill] sm:$0xff] }
 0x338   : > { %v2163_v33 = vadd.f32 %v2162_v62, %v1953_v43  ;;  %v907_v38 = vadd.f32 %v4562_v49, %v3755_v52  ;;  %v2948_v3 = vpop.eup %2947 }
 0x339   : > { %2000 = vmatmul.f32.gmra.mxu0 %v1588_v50  ;;  %2689 = vmatmul.msk.f32.gmra.mxu1 %vm1631_vm3, %v1589_v26  ;;  %v2950_v50 = vpop.eup %2949  ;;  %2951 = vtanh.f32 %v698_v55 }
 0x33a   : > { %2283 = vst.msk [vmem:[%s3981_s9 + $0x120] sm:$0xff] %vm2246_vm4, %v2163_v33  ;;  %2953 = vtanh.f32 %v907_v38  ;;  %v4571_v38 = vld [vmem:[#allocation64_spill] sm:$0xff] }
 0x33e   : > { %v1114_v60 = vpop.f32.mrf.mxu2  ;;  %v1323_v23 = vpop.f32.mrf.mxu3 }
 0x33f   : > { %v1590_v1 = vmul.f32 %v2932_v14, %v1114_v60  ;;  %v1591_v29 = vmul.f32 %v2934_v32, %v1323_v23  ;;  %v1956_v63 = vpop.f32.mrf.mxu0  ;;  %v2165_v0 = vpop.f32.mrf.mxu1  ;;  %v701_v14 = vadd.f32 %v4563_v44, %v3753_v53  ;;  %v4564_v32 = vld [vmem:[#allocation57_spill] sm:$0xff] }
 0x340   : > { %v2166_v42 = vadd.f32 %v2165_v0, %v1956_v63  ;;  %v910_v60 = vadd.f32 %v4564_v32, %v3755_v52  ;;  %v2952_v23 = vpop.eup %2951 }
 0x341   : > { %2003 = vmatmul.f32.gmra.mxu0 %v1590_v1  ;;  %2690 = vmatmul.msk.f32.gmra.mxu1 %vm1631_vm3, %v1591_v29  ;;  %v2954_v1 = vpop.eup %2953  ;;  %2955 = vtanh.f32 %v701_v14 }
 0x342   : > { %2284 = vst.msk [vmem:[%s3981_s9 + $0x128] sm:$0xff] %vm2246_vm4, %v2166_v42  ;;  %2957 = vtanh.f32 %v910_v60 }
 0x346   : > { %v1117_v2 = vpop.f32.mrf.mxu2  ;;  %v1326_v24 = vpop.f32.mrf.mxu3 }
 0x347   : > { %v1592_v5 = vmul.f32 %v2936_v12, %v1117_v2  ;;  %v1593_v40 = vmul.f32 %v2938_v13, %v1326_v24  ;;  %v1959_v11 = vpop.f32.mrf.mxu0  ;;  %v2168_v46 = vpop.f32.mrf.mxu1  ;;  %v704_v12 = vadd.f32 %v4565_v54, %v3753_v53  ;;  %v4566_v13 = vld [vmem:[#allocation59_spill] sm:$0xff] }
 0x348   : > { %v2169_v58 = vadd.f32 %v2168_v46, %v1959_v11  ;;  %v913_v2 = vadd.f32 %v4566_v13, %v3755_v52  ;;  %v2956_v24 = vpop.eup %2955 }
 0x349   : > { %2006 = vmatmul.f32.gmra.mxu0 %v1592_v5  ;;  %2691 = vmatmul.msk.f32.gmra.mxu1 %vm1631_vm3, %v1593_v40  ;;  %v2958_v5 = vpop.eup %2957  ;;  %2959 = vtanh.f32 %v704_v12 }
 0x34a   : > { %2285 = vst.msk [vmem:[%s3981_s9 + $0x130] sm:$0xff] %vm2246_vm4, %v2169_v58  ;;  %2961 = vtanh.f32 %v913_v2 }
 0x34e   : > { %v1120_v10 = vpop.f32.mrf.mxu2  ;;  %v1329_v27 = vpop.f32.mrf.mxu3 }
 0x34f   : > { %v1594_v57 = vmul.f32 %v2940_v56, %v1120_v10  ;;  %v1595_v36 = vmul.f32 %v2942_v45, %v1329_v27  ;;  %v1962_v51 = vpop.f32.mrf.mxu0  ;;  %v2171_v9 = vpop.f32.mrf.mxu1  ;;  %v707_v56 = vadd.f32 %v4567_v41, %v3753_v53  ;;  %v4568_v45 = vld [vmem:[#allocation61_spill] sm:$0xff] }
 0x350   : > { %v2172_v39 = vadd.f32 %v2171_v9, %v1962_v51  ;;  %v916_v10 = vadd.f32 %v4568_v45, %v3755_v52  ;;  %v2960_v27 = vpop.eup %2959 }
 0x351   : > { %2009 = vmatmul.f32.gmra.mxu0 %v1594_v57  ;;  %2692 = vmatmul.msk.f32.gmra.mxu1 %vm1631_vm3, %v1595_v36  ;;  %v2962_v57 = vpop.eup %2961  ;;  %2963 = vtanh.f32 %v707_v56 }
 0x352   : > { %2286 = vst.msk [vmem:[%s3981_s9 + $0x138] sm:$0xff] %vm2246_vm4, %v2172_v39  ;;  %2965 = vtanh.f32 %v916_v10 }
 0x356   : > { %v1123_v35 = vpop.f32.mrf.mxu2  ;;  %v1332_v16 = vpop.f32.mrf.mxu3 }
 0x357   : > { %v1596_v37 = vmul.f32 %v2944_v48, %v1123_v35  ;;  %v1597_v22 = vmul.f32 %v2946_v8, %v1332_v16  ;;  %v1965_v34 = vpop.f32.mrf.mxu0  ;;  %v2174_v28 = vpop.f32.mrf.mxu1  ;;  %v710_v48 = vadd.f32 %v4569_v4, %v3753_v53  ;;  %v4570_v8 = vld [vmem:[#allocation63_spill] sm:$0xff] }
 0x358   : > { %v2175_v30 = vadd.f32 %v2174_v28, %v1965_v34  ;;  %v919_v35 = vadd.f32 %v4570_v8, %v3755_v52  ;;  %v2964_v16 = vpop.eup %2963 }
 0x359   : > { %2012 = vmatmul.f32.gmra.mxu0 %v1596_v37  ;;  %2693 = vmatmul.msk.f32.gmra.mxu1 %vm1631_vm3, %v1597_v22  ;;  %v2966_v37 = vpop.eup %2965  ;;  %2967 = vtanh.f32 %v710_v48 }
 0x35a   : > { %2287 = vst.msk [vmem:[%s3981_s9 + $0x140] sm:$0xff] %vm2246_vm4, %v2175_v30  ;;  %2969 = vtanh.f32 %v919_v35 }
 0x35e   : > { %v1126_v26 = vpop.f32.mrf.mxu2  ;;  %v1335_v43 = vpop.f32.mrf.mxu3 }
 0x35f   : > { %v1598_v62 = vmul.f32 %v2948_v3, %v1126_v26  ;;  %v1599_v33 = vmul.f32 %v2950_v50, %v1335_v43  ;;  %v1968_v18 = vpop.f32.mrf.mxu0  ;;  %v2177_v19 = vpop.f32.mrf.mxu1  ;;  %v713_v3 = vadd.f32 %v4571_v38, %v3753_v53  ;;  %v4572_v50 = vld [vmem:[#allocation65_spill] sm:$0xff] }
 0x360   : > { %v2178_v25 = vadd.f32 %v2177_v19, %v1968_v18  ;;  %v922_v26 = vadd.f32 %v4572_v50, %v3755_v52  ;;  %v2968_v43 = vpop.eup %2967 }
 0x361   : > { %2015 = vmatmul.f32.gmra.mxu0 %v1598_v62  ;;  %2694 = vmatmul.msk.f32.gmra.mxu1 %vm1631_vm3, %v1599_v33  ;;  %v2970_v62 = vpop.eup %2969  ;;  %2971 = vtanh.f32 %v713_v3 }
 0x362   : > { %2288 = vst.msk [vmem:[%s3981_s9 + $0x148] sm:$0xff] %vm2246_vm4, %v2178_v25  ;;  %2973 = vtanh.f32 %v922_v26 }
 0x366   : > { %v1129_v29 = vpop.f32.mrf.mxu2  ;;  %v1338_v63 = vpop.f32.mrf.mxu3 }
 0x367   : > { %v1600_v0 = vmul.f32 %v2952_v23, %v1129_v29  ;;  %v1601_v42 = vmul.f32 %v2954_v1, %v1338_v63  ;;  %v1971_v17 = vpop.f32.mrf.mxu0  ;;  %v2180_v59 = vpop.f32.mrf.mxu1 }
 0x368   : > { %v2181_v7 = vadd.f32 %v2180_v59, %v1971_v17  ;;  %v2972_v53 = vpop.eup %2971 }
 0x369   : > { %2018 = vmatmul.f32.gmra.mxu0 %v1600_v0  ;;  %2695 = vmatmul.msk.f32.gmra.mxu1 %vm1631_vm3, %v1601_v42  ;;  %v2974_v52 = vpop.eup %2973 }
 0x36a   : > { %2289 = vst.msk [vmem:[%s3981_s9 + $0x150] sm:$0xff] %vm2246_vm4, %v2181_v7 }
 0x36e   : > { %v1132_v40 = vpop.f32.mrf.mxu2  ;;  %v1341_v11 = vpop.f32.mrf.mxu3 }
 0x36f   : > { %v1602_v46 = vmul.f32 %v2956_v24, %v1132_v40  ;;  %v1603_v58 = vmul.f32 %v2958_v5, %v1341_v11  ;;  %v1974_v6 = vpop.f32.mrf.mxu0  ;;  %v2183_v31 = vpop.f32.mrf.mxu1 }
 0x370   : > { %v2184_v61 = vadd.f32 %v2183_v31, %v1974_v6 }
 0x371   : > { %2021 = vmatmul.f32.gmra.mxu0 %v1602_v46  ;;  %2696 = vmatmul.msk.f32.gmra.mxu1 %vm1631_vm3, %v1603_v58 }
 0x372   : > { %2290 = vst.msk [vmem:[%s3981_s9 + $0x158] sm:$0xff] %vm2246_vm4, %v2184_v61 }
 0x376   : > { %v1135_v36 = vpop.f32.mrf.mxu2  ;;  %v1344_v51 = vpop.f32.mrf.mxu3 }
 0x377   : > { %v1604_v9 = vmul.f32 %v2960_v27, %v1135_v36  ;;  %v1605_v39 = vmul.f32 %v2962_v57, %v1344_v51  ;;  %v1977_v21 = vpop.f32.mrf.mxu0  ;;  %v2186_v15 = vpop.f32.mrf.mxu1 }
 0x378   : > { %v2187_v20 = vadd.f32 %v2186_v15, %v1977_v21 }
 0x379   : > { %2024 = vmatmul.f32.gmra.mxu0 %v1604_v9  ;;  %2697 = vmatmul.msk.f32.gmra.mxu1 %vm1631_vm3, %v1605_v39 }
 0x37a   : > { %2291 = vst.msk [vmem:[%s3981_s9 + $0x160] sm:$0xff] %vm2246_vm4, %v2187_v20 }
 0x37e   : > { %v1138_v22 = vpop.f32.mrf.mxu2  ;;  %v1347_v34 = vpop.f32.mrf.mxu3 }
 0x37f   : > { %v1606_v28 = vmul.f32 %v2964_v16, %v1138_v22  ;;  %v1607_v30 = vmul.f32 %v2966_v37, %v1347_v34  ;;  %v1980_v47 = vpop.f32.mrf.mxu0  ;;  %v2189_v55 = vpop.f32.mrf.mxu1 }
 0x380   : > { %v2190_v49 = vadd.f32 %v2189_v55, %v1980_v47 }
 0x381   : > { %2027 = vmatmul.f32.gmra.mxu0 %v1606_v28  ;;  %2698 = vmatmul.msk.f32.gmra.mxu1 %vm1631_vm3, %v1607_v30 }
 0x382   : > { %2292 = vst.msk [vmem:[%s3981_s9 + $0x168] sm:$0xff] %vm2246_vm4, %v2190_v49 }
 0x386   : > { %v1141_v33 = vpop.f32.mrf.mxu2  ;;  %v1350_v18 = vpop.f32.mrf.mxu3 }
 0x387   : > { %v1608_v19 = vmul.f32 %v2968_v43, %v1141_v33  ;;  %v1609_v25 = vmul.f32 %v2970_v62, %v1350_v18  ;;  %v1983_v44 = vpop.f32.mrf.mxu0  ;;  %v2192_v14 = vpop.f32.mrf.mxu1 }
 0x388   : > { %v2193_v32 = vadd.f32 %v2192_v14, %v1983_v44 }
 0x389   : > { %2030 = vmatmul.f32.gmra.mxu0 %v1608_v19  ;;  %2699 = vmatmul.msk.f32.gmra.mxu1 %vm1631_vm3, %v1609_v25 }
 0x38a   : > { %2293 = vst.msk [vmem:[%s3981_s9 + $0x170] sm:$0xff] %vm2246_vm4, %v2193_v32 }
 0x38e   : > { %v1144_v60 = vpop.f32.mrf.mxu2  ;;  %v1353_v23 = vpop.f32.mrf.mxu3 }
 0x38f   : > { %v1610_v1 = vmul.f32 %v2972_v53, %v1144_v60  ;;  %v1611_v29 = vmul.f32 %v2974_v52, %v1353_v23  ;;  %v1986_v63 = vpop.f32.mrf.mxu0  ;;  %v2195_v0 = vpop.f32.mrf.mxu1 }
 0x390   : > { %v2196_v42 = vadd.f32 %v2195_v0, %v1986_v63 }
 0x391   : > { %2033 = vmatmul.f32.gmra.mxu0 %v1610_v1  ;;  %2700 = vmatmul.msk.f32.gmra.mxu1 %vm1631_vm3, %v1611_v29 }
 0x392   : > { %2294 = vst.msk [vmem:[%s3981_s9 + $0x178] sm:$0xff] %vm2246_vm4, %v2196_v42 }
 0x397   : > { %v1989_v17 = vpop.f32.mrf.mxu0  ;;  %v2198_v59 = vpop.f32.mrf.mxu1 }
 0x398   : > { %v2199_v7 = vadd.f32 %v2198_v59, %v1989_v17 }
 0x39a   : > { %2295 = vst.msk [vmem:[%s3981_s9 + $0x180] sm:$0xff] %vm2246_vm4, %v2199_v7 }
 0x39f   : > { %v1992_v54 = vpop.f32.mrf.mxu0  ;;  %v2201_v12 = vpop.f32.mrf.mxu1 }
 0x3a0   : > { %v2202_v13 = vadd.f32 %v2201_v12, %v1992_v54 }
 0x3a2   : > { %2296 = vst.msk [vmem:[%s3981_s9 + $0x188] sm:$0xff] %vm2246_vm4, %v2202_v13 }
 0x3a7   : > { %v1995_v2 = vpop.f32.mrf.mxu0  ;;  %v2204_v24 = vpop.f32.mrf.mxu1 }
 0x3a8   : > { %v2205_v5 = vadd.f32 %v2204_v24, %v1995_v2 }
 0x3aa   : > { %2297 = vst.msk [vmem:[%s3981_s9 + $0x190] sm:$0xff] %vm2246_vm4, %v2205_v5 }
 0x3af   : > { %v1998_v40 = vpop.f32.mrf.mxu0  ;;  %v2207_v11 = vpop.f32.mrf.mxu1 }
 0x3b0   : > { %v2208_v46 = vadd.f32 %v2207_v11, %v1998_v40 }
 0x3b2   : > { %2298 = vst.msk [vmem:[%s3981_s9 + $0x198] sm:$0xff] %vm2246_vm4, %v2208_v46 }
 0x3b7   : > { %v2001_v58 = vpop.f32.mrf.mxu0  ;;  %v2210_v6 = vpop.f32.mrf.mxu1 }
 0x3b8   : > { %v2211_v31 = vadd.f32 %v2210_v6, %v2001_v58 }
 0x3ba   : > { %2299 = vst.msk [vmem:[%s3981_s9 + $0x1a0] sm:$0xff] %vm2246_vm4, %v2211_v31 }
 0x3bf   : > { %v2004_v61 = vpop.f32.mrf.mxu0  ;;  %v2213_v41 = vpop.f32.mrf.mxu1 }
 0x3c0   : > { %v2214_v56 = vadd.f32 %v2213_v41, %v2004_v61 }
 0x3c2   : > { %2300 = vst.msk [vmem:[%s3981_s9 + $0x1a8] sm:$0xff] %vm2246_vm4, %v2214_v56 }
 0x3c7   : > { %v2007_v45 = vpop.f32.mrf.mxu0  ;;  %v2216_v10 = vpop.f32.mrf.mxu1 }
 0x3c8   : > { %v2217_v27 = vadd.f32 %v2216_v10, %v2007_v45 }
 0x3ca   : > { %2301 = vst.msk [vmem:[%s3981_s9 + $0x1b0] sm:$0xff] %vm2246_vm4, %v2217_v27 }
 0x3cf   : > { %v2010_v57 = vpop.f32.mrf.mxu0  ;;  %v2219_v36 = vpop.f32.mrf.mxu1 }
 0x3d0   : > { %v2220_v51 = vadd.f32 %v2219_v36, %v2010_v57 }
 0x3d2   : > { %2302 = vst.msk [vmem:[%s3981_s9 + $0x1b8] sm:$0xff] %vm2246_vm4, %v2220_v51 }
 0x3d7   : > { %v2013_v9 = vpop.f32.mrf.mxu0  ;;  %v2222_v39 = vpop.f32.mrf.mxu1 }
 0x3d8   : > { %v2223_v21 = vadd.f32 %v2222_v39, %v2013_v9 }
 0x3da   : > { %2303 = vst.msk [vmem:[%s3981_s9 + $0x1c0] sm:$0xff] %vm2246_vm4, %v2223_v21 }
 0x3df   : > { %v2016_v15 = vpop.f32.mrf.mxu0  ;;  %v2225_v20 = vpop.f32.mrf.mxu1 }
 0x3e0   : > { %v2226_v4 = vadd.f32 %v2225_v20, %v2016_v15 }
 0x3e2   : > { %2304 = vst.msk [vmem:[%s3981_s9 + $0x1c8] sm:$0xff] %vm2246_vm4, %v2226_v4 }
 0x3e7   : > { %v2019_v48 = vpop.f32.mrf.mxu0  ;;  %v2228_v8 = vpop.f32.mrf.mxu1 }
 0x3e8   : > { %v2229_v35 = vadd.f32 %v2228_v8, %v2019_v48 }
 0x3ea   : > { %2305 = vst.msk [vmem:[%s3981_s9 + $0x1d0] sm:$0xff] %vm2246_vm4, %v2229_v35 }
 0x3ef   : > { %v2022_v16 = vpop.f32.mrf.mxu0  ;;  %v2231_v37 = vpop.f32.mrf.mxu1 }
 0x3f0   : > { %v2232_v22 = vadd.f32 %v2231_v37, %v2022_v16 }
 0x3f2   : > { %2306 = vst.msk [vmem:[%s3981_s9 + $0x1d8] sm:$0xff] %vm2246_vm4, %v2232_v22 }
 0x3f7   : > { %v2025_v34 = vpop.f32.mrf.mxu0  ;;  %v2234_v28 = vpop.f32.mrf.mxu1 }
 0x3f8   : > { %v2235_v30 = vadd.f32 %v2234_v28, %v2025_v34 }
 0x3fa   : > { %2307 = vst.msk [vmem:[%s3981_s9 + $0x1e0] sm:$0xff] %vm2246_vm4, %v2235_v30 }
 0x3ff   : > { %v2028_v47 = vpop.f32.mrf.mxu0  ;;  %v2237_v55 = vpop.f32.mrf.mxu1 }
 0x400   : > { %v2238_v49 = vadd.f32 %v2237_v55, %v2028_v47 }
 0x402   : > { %2308 = vst.msk [vmem:[%s3981_s9 + $0x1e8] sm:$0xff] %vm2246_vm4, %v2238_v49 }
 0x407   : > { %v2031_v38 = vpop.f32.mrf.mxu0  ;;  %v2240_v3 = vpop.f32.mrf.mxu1 }
 0x408   : > { %v2241_v50 = vadd.f32 %v2240_v3, %v2031_v38 }
 0x40a   : > { %2309 = vst.msk [vmem:[%s3981_s9 + $0x1f0] sm:$0xff] %vm2246_vm4, %v2241_v50 }
 0x40f   : > { %v2034_v26 = vpop.f32.mrf.mxu0  ;;  %v2243_v43 = vpop.f32.mrf.mxu1 }
 0x410   : > { %v2244_v62 = vadd.f32 %v2243_v43, %v2034_v26 }
 0x412   : > { %2310 = vst.msk [vmem:[%s3981_s9 + $0x1f8] sm:$0xff] %vm2246_vm4, %v2244_v62 }
 0x413 PF: > { %s15_s18 = sadd.s32 1, %s3013_s18  }
 0x414   : > { %p12_p4 = scmp.ge.s32.totalorder %s15_s18, 6  }
 0x416   :  { %14 = sbr.rel (!%p12_p4) target bundleno = 1 (0x1), region = 70 }

</bundles_post_ra>
